<compile_context>
chip_gen: v6e
topology: v6e:2x2x1
jax: 0.10.0
libtpu: 0.0.40
codegen_flags: <defaults>
</compile_context>

<pallas_src>
import functools
import math

import jax
import jax.numpy as jnp
from jax import lax
from jax.experimental import pallas as pl
from jax.experimental.pallas import tpu as pltpu


def _round_up(n, m):
    return ((n + m - 1) // m) * m


def _silu(x):
    # silu(x) = x * sigmoid(x);  sigmoid(x) = 0.5 * (tanh(0.5 x) + 1):
    # one EUP tanh per element, no divide/exp chain on the VALU slots.
    return x * (0.5 * jnp.tanh(0.5 * x) + 0.5)


def _fitter_kernel(*refs, num_hidden_layers, use_bf16_matmul):
    # Transposed ("batch in lanes") layout:
    #   x_ref : (2, tm)            input tile, batch along lanes
    #   w1_ref: (H, 2),  b1_ref: (H, 1)
    #   wh_ref: (L, H, H), bh_ref: (L, H, 1)   stacked hidden layers (L > 0 only)
    #   wl_ref: (H, 1)                          last layer (weight stored transposed)
    #   bl_ref: (1, 1) scalar in SMEM
    #   o_ref : (1, tm)            lane-dense output tile
    if num_hidden_layers > 0:
        x_ref, w1_ref, b1_ref, wh_ref, bh_ref, wl_ref, bl_ref, o_ref = refs
    else:
        x_ref, w1_ref, b1_ref, wl_ref, bl_ref, o_ref = refs
        wh_ref = bh_ref = None

    x0 = x_ref[0:1, :]                                    # (1, tm)
    x1 = x_ref[1:2, :]                                    # (1, tm)

    # First layer (K=2): keep it off the MXU — two VPU broadcast-FMAs.
    h = _silu(w1_ref[:, 0:1] * x0 + w1_ref[:, 1:2] * x1 + b1_ref[...])   # (H, tm)

    # Hidden layers: (H,H) @ (H,tm) on the MXU, f32 accumulation, SiLU in f32.
    if num_hidden_layers > 0:
        def body(l, h):
            w = wh_ref[l]
            if use_bf16_matmul:
                z = jnp.dot(w.astype(jnp.bfloat16), h.astype(jnp.bfloat16),
                            preferred_element_type=jnp.float32)
            else:
                z = jnp.dot(w, h, preferred_element_type=jnp.float32)
            return _silu(z + bh_ref[l])

        # fori_loop (not a static Python for) bounds vreg live ranges while
        # keeping LLO visibility: full unroll for shallow nets, partial unroll
        # for deep ones (no code-size blowup).
        unroll = True if num_hidden_layers <= 8 else 4
        h = lax.fori_loop(0, num_hidden_layers, body, h, unroll=unroll)

    # Last layer (output width 1): VPU multiply + XLU sublane reduce; the bias
    # is an SMEM scalar added after the reduce.
    out = jnp.sum(h * wl_ref[...], axis=0, keepdims=True) + bl_ref[0, 0]  # (1, tm)
    o_ref[...] = out.astype(o_ref.dtype)


def _num_tensorcores():
    """2 TensorCores visible to a parallel grid axis (v7x / megacore), else 1."""
    try:
        kind = jax.devices()[0].device_kind.lower()
    except Exception:
        return 1
    return 2 if any(t in kind for t in ("v7", "v4", "v3")) else 1


def _select_tiling(N, n_cores, tm_cap=512):
    """Pick (tm, Np).  Single grid step whenever the batch fits in one
    <=tm_cap-lane tile (per-step overhead dominates at small N); otherwise
    tm_cap-lane tiles (bounded VPU live ranges) with the grid padded to a
    multiple of the TC count so no core idles on the remainder step."""
    Np128 = _round_up(max(N, 1), 128)
    if Np128 <= tm_cap:
        return Np128, Np128                       # grid = 1
    step = tm_cap * (2 if n_cores > 1 else 1)
    return tm_cap, _round_up(Np128, step)


def fitter_forward(x, params, *, tm=None, use_bf16_matmul=False):
    """x: (N, 2) float32.  Returns (N, 1) float32."""
    w1, b1, wh, bh, wl, bl = params
    N = x.shape[0]
    H = w1.shape[0]
    L = wh.shape[0]

    # Pad hidden width to a sublane multiple.  Exact: padded units have zero
    # weights/bias, silu(0) == 0, so they contribute nothing downstream.
    Hp = _round_up(H, 8)
    if Hp != H:
        dH = Hp - H
        w1 = jnp.pad(w1, ((0, dH), (0, 0)))
        b1 = jnp.pad(b1, ((0, dH), (0, 0)))
        wh = jnp.pad(wh, ((0, 0), (0, dH), (0, dH)))
        bh = jnp.pad(bh, ((0, 0), (0, dH), (0, 0)))
        wl = jnp.pad(wl, ((0, dH), (0, 0)))
        H = Hp

    # Generation-aware batch tiling.  Remainder lanes are zero-padded and
    # sliced off afterwards.
    n_cores = _num_tensorcores()
    if tm is None:
        tm, Np = _select_tiling(N, n_cores)
    else:
        tm = max(128, _round_up(tm, 128))
        Np = _round_up(max(N, 1), tm)
    xt = jnp.zeros((2, Np), x.dtype).at[:, :N].set(x.T)   # lane-dense input slab

    kernel = functools.partial(_fitter_kernel, num_hidden_layers=L,
                               use_bf16_matmul=use_bf16_matmul)

    # Grid-invariant weights: constant index_map -> fetched once; default
    # double-buffering would only double their VMEM footprint.
    def invariant(shape, single_buffered):
        if single_buffered:
            return pl.BlockSpec(shape, lambda i: (0,) * len(shape),
                                pipeline_mode=pl.Buffered(1))
        return pl.BlockSpec(shape, lambda i: (0,) * len(shape))

    # Explicit VMEM budget (v7x: 64 MiB physical, 32 MiB default scoped).
    weight_bytes = int(4 * (w1.size + b1.size + wh.size + bh.size + wl.size))
    act_bytes = int(4 * tm * 4 * max(H, 8))       # h + silu/matmul temporaries
    io_bytes = int(2 * 4 * tm * (2 + 8))          # double-buffered x / out tiles
    vmem_needed = 2 * weight_bytes + act_bytes + io_bytes
    vmem_limit = int(min(max(2 * vmem_needed, 32 << 20), 48 << 20))
    # TODO(synk): when 4*L*H*H outgrows the VMEM budget (v7x), stream wh per
    # layer via memory_space=pl.ANY + pltpu.make_async_copy instead of keeping
    # the whole stack resident.

    flops = int(2 * Np * (2 * H + L * H * H + H))
    transcendentals = int(Np * H * (L + 1))       # one tanh per hidden activation
    bytes_accessed = int(4 * (xt.size + Np + w1.size + b1.size + wh.size
                              + bh.size + wl.size + bl.size))

    def build(single_buffered):
        if L > 0:
            in_specs = [
                pl.BlockSpec((2, tm), lambda i: (0, i)),          # x tile
                invariant((H, 2), single_buffered),               # w1
                invariant((H, 1), single_buffered),               # b1
                invariant((L, H, H), single_buffered),            # hidden weights
                invariant((L, H, 1), single_buffered),            # hidden biases
                invariant((H, 1), single_buffered),               # w_last (transposed)
                pl.BlockSpec(memory_space=pltpu.MemorySpace.SMEM),  # b_last scalar
            ]
            args = (xt, w1, b1, wh, bh, wl, bl)
        else:
            in_specs = [
                pl.BlockSpec((2, tm), lambda i: (0, i)),
                invariant((H, 2), single_buffered),
                invariant((H, 1), single_buffered),
                invariant((H, 1), single_buffered),
                pl.BlockSpec(memory_space=pltpu.MemorySpace.SMEM),
            ]
            args = (xt, w1, b1, wl, bl)
        call = pl.pallas_call(
            kernel,
            out_shape=jax.ShapeDtypeStruct((1, Np), jnp.float32),
            grid_spec=pl.GridSpec(
                grid=(Np // tm,),
                in_specs=in_specs,
                out_specs=pl.BlockSpec((1, tm), lambda i: (0, i)),
            ),
            compiler_params=pltpu.CompilerParams(
                dimension_semantics=("parallel",),
                vmem_limit_bytes=vmem_limit),
            cost_estimate=pl.CostEstimate(
                flops=flops,
                transcendentals=transcendentals,
                bytes_accessed=bytes_accessed),
        )
        return call, args

    try:
        call, args = build(single_buffered=True)
        out_t = call(*args)
        out_t.block_until_ready()
    except Exception:
        # Fallback if single-buffered pipeline_mode is unavailable/rejected.
        call, args = build(single_buffered=False)
        out_t = call(*args)

    return out_t[:, :N].T   # (N, 1)


def init_params(key, num_hidden_nodes, num_hidden_layers):
    """Xavier-uniform weights (gain = calculate_gain('relu') = sqrt(2)) and
    torch.nn.Linear default uniform biases.  Weights are stored
    (out_features, in_features) — same as torch.nn.Linear.weight — and biases
    as column vectors; the last-layer weight is stored as (H, 1) (torch weight
    transposed) so the kernel can reduce over sublanes."""
    gain = math.sqrt(2.0)

    def xavier(key, fan_in, fan_out, shape):
        a = gain * math.sqrt(6.0 / (fan_in + fan_out))
        return jax.random.uniform(key, shape, jnp.float32, -a, a)

    def bias(key, fan_in, fan_out):
        b = 1.0 / math.sqrt(fan_in)
        return jax.random.uniform(key, (fan_out, 1), jnp.float32, -b, b)

    H, L = num_hidden_nodes, num_hidden_layers
    keys = jax.random.split(key, 2 * (L + 2))

    w1 = xavier(keys[0], 2, H, (H, 2))
    b1 = bias(keys[1], 2, H)
    if L > 0:
        wh = jnp.stack([xavier(keys[2 + 2 * l], H, H, (H, H)) for l in range(L)])
        bh = jnp.stack([bias(keys[3 + 2 * l], H, H) for l in range(L)])
    else:
        wh = jnp.zeros((0, H, H), jnp.float32)
        bh = jnp.zeros((0, H, 1), jnp.float32)
    wl = xavier(keys[2 + 2 * L], H, 1, (H, 1))   # stored transposed: (H, 1)
    bl = bias(keys[3 + 2 * L], H, 1)
    return (w1, b1, wh, bh, wl, bl)


def fitter_ref(x, params):
    """Pure-JAX reference (uses jax.nn.sigmoid, independent of the kernel's
    tanh-based silu) for correctness checking."""
    w1, b1, wh, bh, wl, bl = params
    silu = lambda v: v * jax.nn.sigmoid(v)
    h = silu(w1 @ x.T + b1)                                 # (H, N)
    for l in range(wh.shape[0]):
        h = silu(wh[l] @ h + bh[l])
    return (jnp.sum(h * wl, axis=0, keepdims=True) + bl).T  # (N, 1)


if __name__ == "__main__":
    num_hidden_nodes = 32
    num_hidden_layers = 2
    N = 500            # not a multiple of 128 -> exercises the zero-pad / slice path

    key = jax.random.PRNGKey(0)
    k_params, k_x = jax.random.split(key)

    params = init_params(k_params, num_hidden_nodes, num_hidden_layers)
    # input: (N, 2) = concatenated (x, t) collocation coordinates, float32
    x = jax.random.uniform(k_x, (N, 2), jnp.float32, -1.0, 1.0)

    # Auto tiling: single 512-lane grid step at this size on every TPU generation.
    out = fitter_forward(x, params)
    jax.block_until_ready(out)

    ref = fitter_ref(x, params)
    assert out.shape == (N, 1)
    assert jnp.allclose(out, ref, atol=2e-5, rtol=1e-4), "mismatch vs reference"

    print("KERNEL_OK")
</pallas_src>

<mosaic_0001>
module attributes {stable_mosaic.version = 11 : i64} {
  func.func @_fitter_kernel(%arg0: i32, %arg1: memref<2x512xf32, #tpu.memory_space<vmem>>, %arg2: memref<32x2xf32, #tpu.memory_space<vmem>>, %arg3: memref<32x1xf32, #tpu.memory_space<vmem>>, %arg4: memref<2x32x32xf32, #tpu.memory_space<vmem>>, %arg5: memref<2x32x1xf32, #tpu.memory_space<vmem>>, %arg6: memref<32x1xf32, #tpu.memory_space<vmem>>, %arg7: memref<1x1xf32, #tpu.memory_space<smem>>, %arg8: memref<1x512xf32, #tpu.memory_space<vmem>>) attributes {dimension_semantics = [#tpu.dimension_semantics<parallel>], iteration_bounds = array<i64: 1>, scalar_prefetch = 0 : i64, scratch_operands = 0 : i64, tpu.core_type = #tpu.core_type<tc>, window_params = [{transform_indices = @transform_0, window_bounds = array<i64: 2, 512>}, {pipeline_mode = #tpu.pipeline_mode<synchronous>, transform_indices = @transform_1, window_bounds = array<i64: 32, 2>}, {pipeline_mode = #tpu.pipeline_mode<synchronous>, transform_indices = @transform_2, window_bounds = array<i64: 32, 1>}, {pipeline_mode = #tpu.pipeline_mode<synchronous>, transform_indices = @transform_3, window_bounds = array<i64: 2, 32, 32>}, {pipeline_mode = #tpu.pipeline_mode<synchronous>, transform_indices = @transform_4, window_bounds = array<i64: 2, 32, 1>}, {pipeline_mode = #tpu.pipeline_mode<synchronous>, transform_indices = @transform_5, window_bounds = array<i64: 32, 1>}, {transform_indices = @transform_6, window_bounds = array<i64: 1, 1>}, {transform_indices = @transform_7, window_bounds = array<i64: 1, 512>}]} {
    %c0 = arith.constant 0 : index
    %c0_0 = arith.constant 0 : index
    %0 = vector.load %arg1[%c0, %c0_0] : memref<2x512xf32, #tpu.memory_space<vmem>>, vector<1x512xf32>
    %c1 = arith.constant 1 : index
    %c0_1 = arith.constant 0 : index
    %1 = vector.load %arg1[%c1, %c0_1] : memref<2x512xf32, #tpu.memory_space<vmem>>, vector<1x512xf32>
    %c0_2 = arith.constant 0 : index
    %c0_3 = arith.constant 0 : index
    %2 = vector.load %arg2[%c0_2, %c0_3] : memref<32x2xf32, #tpu.memory_space<vmem>>, vector<32x1xf32>
    %3 = vector.broadcast %2 : vector<32x1xf32> to vector<32x512xf32>
    %4 = vector.broadcast %0 : vector<1x512xf32> to vector<32x512xf32>
    %5 = arith.mulf %3, %4 : vector<32x512xf32>
    %c0_4 = arith.constant 0 : index
    %c1_5 = arith.constant 1 : index
    %6 = vector.load %arg2[%c0_4, %c1_5] : memref<32x2xf32, #tpu.memory_space<vmem>>, vector<32x1xf32>
    %7 = vector.broadcast %6 : vector<32x1xf32> to vector<32x512xf32>
    %8 = vector.broadcast %1 : vector<1x512xf32> to vector<32x512xf32>
    %9 = arith.mulf %7, %8 : vector<32x512xf32>
    %10 = arith.addf %5, %9 : vector<32x512xf32>
    %c0_6 = arith.constant 0 : index
    %c0_7 = arith.constant 0 : index
    %11 = vector.load %arg3[%c0_6, %c0_7] : memref<32x1xf32, #tpu.memory_space<vmem>>, vector<32x1xf32>
    %12 = vector.broadcast %11 : vector<32x1xf32> to vector<32x512xf32>
    %13 = arith.addf %10, %12 : vector<32x512xf32>
    %cst = arith.constant 5.000000e-01 : f32
    %14 = vector.broadcast %cst : f32 to vector<32x512xf32>
    %15 = arith.mulf %14, %13 : vector<32x512xf32>
    %16 = math.tanh %15 : vector<32x512xf32>
    %cst_8 = arith.constant 5.000000e-01 : f32
    %17 = vector.broadcast %cst_8 : f32 to vector<32x512xf32>
    %18 = arith.mulf %17, %16 : vector<32x512xf32>
    %cst_9 = arith.constant 5.000000e-01 : f32
    %19 = vector.broadcast %cst_9 : f32 to vector<32x512xf32>
    %20 = arith.addf %18, %19 : vector<32x512xf32>
    %21 = arith.mulf %13, %20 : vector<32x512xf32>
    %c0_i32 = arith.constant 0 : i32
    %22 = arith.index_cast %c0_i32 : i32 to index
    %c0_10 = arith.constant 0 : index
    %c0_11 = arith.constant 0 : index
    %23 = vector.load %arg4[%22, %c0_10, %c0_11] : memref<2x32x32xf32, #tpu.memory_space<vmem>>, vector<1x32x32xf32>
    %24 = vector.shape_cast %23 : vector<1x32x32xf32> to vector<32x32xf32>
    %cst_12 = arith.constant dense<0.000000e+00> : vector<32x512xf32>
    %25 = tpu.matmul %24, %21, %cst_12 {dimension_numbers = #tpu.dot_dimension_numbers<[1], [0], [0], [1], [0, 0, 1, 1], [], []>} : vector<32x32xf32>, vector<32x512xf32>, vector<32x512xf32> -> vector<32x512xf32>
    %26 = arith.index_cast %c0_i32 : i32 to index
    %c0_13 = arith.constant 0 : index
    %c0_14 = arith.constant 0 : index
    %27 = vector.load %arg5[%26, %c0_13, %c0_14] : memref<2x32x1xf32, #tpu.memory_space<vmem>>, vector<1x32x1xf32>
    %28 = vector.shape_cast %27 : vector<1x32x1xf32> to vector<32x1xf32>
    %29 = vector.broadcast %28 : vector<32x1xf32> to vector<32x512xf32>
    %30 = arith.addf %25, %29 : vector<32x512xf32>
    %cst_15 = arith.constant 5.000000e-01 : f32
    %31 = vector.broadcast %cst_15 : f32 to vector<32x512xf32>
    %32 = arith.mulf %31, %30 : vector<32x512xf32>
    %33 = math.tanh %32 : vector<32x512xf32>
    %cst_16 = arith.constant 5.000000e-01 : f32
    %34 = vector.broadcast %cst_16 : f32 to vector<32x512xf32>
    %35 = arith.mulf %34, %33 : vector<32x512xf32>
    %cst_17 = arith.constant 5.000000e-01 : f32
    %36 = vector.broadcast %cst_17 : f32 to vector<32x512xf32>
    %37 = arith.addf %35, %36 : vector<32x512xf32>
    %38 = arith.mulf %30, %37 : vector<32x512xf32>
    %c1_i32 = arith.constant 1 : i32
    %39 = arith.index_cast %c1_i32 : i32 to index
    %c0_18 = arith.constant 0 : index
    %c0_19 = arith.constant 0 : index
    %40 = vector.load %arg4[%39, %c0_18, %c0_19] : memref<2x32x32xf32, #tpu.memory_space<vmem>>, vector<1x32x32xf32>
    %41 = vector.shape_cast %40 : vector<1x32x32xf32> to vector<32x32xf32>
    %cst_20 = arith.constant dense<0.000000e+00> : vector<32x512xf32>
    %42 = tpu.matmul %41, %38, %cst_20 {dimension_numbers = #tpu.dot_dimension_numbers<[1], [0], [0], [1], [0, 0, 1, 1], [], []>} : vector<32x32xf32>, vector<32x512xf32>, vector<32x512xf32> -> vector<32x512xf32>
    %43 = arith.index_cast %c1_i32 : i32 to index
    %c0_21 = arith.constant 0 : index
    %c0_22 = arith.constant 0 : index
    %44 = vector.load %arg5[%43, %c0_21, %c0_22] : memref<2x32x1xf32, #tpu.memory_space<vmem>>, vector<1x32x1xf32>
    %45 = vector.shape_cast %44 : vector<1x32x1xf32> to vector<32x1xf32>
    %46 = vector.broadcast %45 : vector<32x1xf32> to vector<32x512xf32>
    %47 = arith.addf %42, %46 : vector<32x512xf32>
    %cst_23 = arith.constant 5.000000e-01 : f32
    %48 = vector.broadcast %cst_23 : f32 to vector<32x512xf32>
    %49 = arith.mulf %48, %47 : vector<32x512xf32>
    %50 = math.tanh %49 : vector<32x512xf32>
    %cst_24 = arith.constant 5.000000e-01 : f32
    %51 = vector.broadcast %cst_24 : f32 to vector<32x512xf32>
    %52 = arith.mulf %51, %50 : vector<32x512xf32>
    %cst_25 = arith.constant 5.000000e-01 : f32
    %53 = vector.broadcast %cst_25 : f32 to vector<32x512xf32>
    %54 = arith.addf %52, %53 : vector<32x512xf32>
    %55 = arith.mulf %47, %54 : vector<32x512xf32>
    %c2_i32 = arith.constant 2 : i32
    %c0_26 = arith.constant 0 : index
    %c0_27 = arith.constant 0 : index
    %56 = vector.load %arg6[%c0_26, %c0_27] : memref<32x1xf32, #tpu.memory_space<vmem>>, vector<32x1xf32>
    %57 = vector.broadcast %56 : vector<32x1xf32> to vector<32x512xf32>
    %58 = arith.mulf %55, %57 : vector<32x512xf32>
    %cst_28 = arith.constant dense<0.000000e+00> : vector<512xf32>
    %59 = vector.multi_reduction <add>, %58, %cst_28 [0] : vector<32x512xf32> to vector<512xf32>
    %60 = vector.shape_cast %59 : vector<512xf32> to vector<1x512xf32>
    %c0_29 = arith.constant 0 : index
    %c0_30 = arith.constant 0 : index
    %61 = memref.load %arg7[%c0_29, %c0_30] : memref<1x1xf32, #tpu.memory_space<smem>>
    %62 = vector.broadcast %61 : f32 to vector<1x512xf32>
    %63 = arith.addf %60, %62 : vector<1x512xf32>
    %c0_31 = arith.constant 0 : index
    %c0_32 = arith.constant 0 : index
    %64 = vector.load %arg8[%c0_31, %c0_32] : memref<1x512xf32, #tpu.memory_space<vmem>>, vector<1x512xf32>
    tpu.vector_store %arg8[%c0_31, %c0_32], %63 {strides = array<i32>} : memref<1x512xf32, #tpu.memory_space<vmem>>, vector<1x512xf32>,
    return
  }
  func.func @transform_0(%arg0: i32) -> (i32, i32) {
    %c0_i32 = arith.constant 0 : i32
    %c0_i32_0 = arith.constant 0 : i32
    return %c0_i32, %arg0 : i32, i32
  }
  func.func @transform_1(%arg0: i32) -> (i32, i32) {
    %c0_i32 = arith.constant 0 : i32
    %c0_i32_0 = arith.constant 0 : i32
    %c0_i32_1 = arith.constant 0 : i32
    return %c0_i32, %c0_i32_0 : i32, i32
  }
  func.func @transform_2(%arg0: i32) -> (i32, i32) {
    %c0_i32 = arith.constant 0 : i32
    %c0_i32_0 = arith.constant 0 : i32
    %c0_i32_1 = arith.constant 0 : i32
    return %c0_i32, %c0_i32_0 : i32, i32
  }
  func.func @transform_3(%arg0: i32) -> (i32, i32, i32) {
    %c0_i32 = arith.constant 0 : i32
    %c0_i32_0 = arith.constant 0 : i32
    %c0_i32_1 = arith.constant 0 : i32
    %c0_i32_2 = arith.constant 0 : i32
    return %c0_i32, %c0_i32_0, %c0_i32_1 : i32, i32, i32
  }
  func.func @transform_4(%arg0: i32) -> (i32, i32, i32) {
    %c0_i32 = arith.constant 0 : i32
    %c0_i32_0 = arith.constant 0 : i32
    %c0_i32_1 = arith.constant 0 : i32
    %c0_i32_2 = arith.constant 0 : i32
    return %c0_i32, %c0_i32_0, %c0_i32_1 : i32, i32, i32
  }
  func.func @transform_5(%arg0: i32) -> (i32, i32) {
    %c0_i32 = arith.constant 0 : i32
    %c0_i32_0 = arith.constant 0 : i32
    %c0_i32_1 = arith.constant 0 : i32
    return %c0_i32, %c0_i32_0 : i32, i32
  }
  func.func @transform_6(%arg0: i32) -> (i32, i32) {
    %c0_i32 = arith.constant 0 : i32
    %c0_i32_0 = arith.constant 0 : i32
    %c0_i32_1 = arith.constant 0 : i32
    return %c0_i32, %c0_i32_0 : i32, i32
  }
  func.func @transform_7(%arg0: i32) -> (i32, i32) {
    %c0_i32 = arith.constant 0 : i32
    %c0_i32_0 = arith.constant 0 : i32
    return %c0_i32, %arg0 : i32, i32
  }
}

module attributes {stable_mosaic.version = 11 : i64} {
  func.func @_fitter_kernel(%arg0: i32, %arg1: memref<2x512xf32, #tpu.memory_space<vmem>>, %arg2: memref<32x2xf32, #tpu.memory_space<vmem>>, %arg3: memref<32x1xf32, #tpu.memory_space<vmem>>, %arg4: memref<2x32x32xf32, #tpu.memory_space<vmem>>, %arg5: memref<2x32x1xf32, #tpu.memory_space<vmem>>, %arg6: memref<32x1xf32, #tpu.memory_space<vmem>>, %arg7: memref<1x1xf32, #tpu.memory_space<smem>>, %arg8: memref<1x512xf32, #tpu.memory_space<vmem>>) attributes {dimension_semantics = [#tpu.dimension_semantics<parallel>], iteration_bounds = array<i64: 1>, scalar_prefetch = 0 : i64, scratch_operands = 0 : i64, tpu.core_type = #tpu.core_type<tc>, window_params = [{transform_indices = @transform_0, window_bounds = array<i64: 2, 512>}, {pipeline_mode = #tpu.pipeline_mode<synchronous>, transform_indices = @transform_1, window_bounds = array<i64: 32, 2>}, {pipeline_mode = #tpu.pipeline_mode<synchronous>, transform_indices = @transform_2, window_bounds = array<i64: 32, 1>}, {pipeline_mode = #tpu.pipeline_mode<synchronous>, transform_indices = @transform_3, window_bounds = array<i64: 2, 32, 32>}, {pipeline_mode = #tpu.pipeline_mode<synchronous>, transform_indices = @transform_4, window_bounds = array<i64: 2, 32, 1>}, {pipeline_mode = #tpu.pipeline_mode<synchronous>, transform_indices = @transform_5, window_bounds = array<i64: 32, 1>}, {transform_indices = @transform_6, window_bounds = array<i64: 1, 1>}, {transform_indices = @transform_7, window_bounds = array<i64: 1, 512>}]} {
    %c0 = arith.constant 0 : index
    %c0_0 = arith.constant 0 : index
    %0 = vector.load %arg1[%c0, %c0_0] : memref<2x512xf32, #tpu.memory_space<vmem>>, vector<1x512xf32>
    %c1 = arith.constant 1 : index
    %c0_1 = arith.constant 0 : index
    %1 = vector.load %arg1[%c1, %c0_1] : memref<2x512xf32, #tpu.memory_space<vmem>>, vector<1x512xf32>
    %c0_2 = arith.constant 0 : index
    %c0_3 = arith.constant 0 : index
    %2 = vector.load %arg2[%c0_2, %c0_3] : memref<32x2xf32, #tpu.memory_space<vmem>>, vector<32x1xf32>
    %3 = vector.broadcast %2 : vector<32x1xf32> to vector<32x512xf32>
    %4 = vector.broadcast %0 : vector<1x512xf32> to vector<32x512xf32>
    %5 = arith.mulf %3, %4 : vector<32x512xf32>
    %c0_4 = arith.constant 0 : index
    %c1_5 = arith.constant 1 : index
    %6 = vector.load %arg2[%c0_4, %c1_5] : memref<32x2xf32, #tpu.memory_space<vmem>>, vector<32x1xf32>
    %7 = vector.broadcast %6 : vector<32x1xf32> to vector<32x512xf32>
    %8 = vector.broadcast %1 : vector<1x512xf32> to vector<32x512xf32>
    %9 = arith.mulf %7, %8 : vector<32x512xf32>
    %10 = arith.addf %5, %9 : vector<32x512xf32>
    %c0_6 = arith.constant 0 : index
    %c0_7 = arith.constant 0 : index
    %11 = vector.load %arg3[%c0_6, %c0_7] : memref<32x1xf32, #tpu.memory_space<vmem>>, vector<32x1xf32>
    %12 = vector.broadcast %11 : vector<32x1xf32> to vector<32x512xf32>
    %13 = arith.addf %10, %12 : vector<32x512xf32>
    %cst = arith.constant 5.000000e-01 : f32
    %14 = vector.broadcast %cst : f32 to vector<32x512xf32>
    %15 = arith.mulf %14, %13 : vector<32x512xf32>
    %16 = math.tanh %15 : vector<32x512xf32>
    %cst_8 = arith.constant 5.000000e-01 : f32
    %17 = vector.broadcast %cst_8 : f32 to vector<32x512xf32>
    %18 = arith.mulf %17, %16 : vector<32x512xf32>
    %cst_9 = arith.constant 5.000000e-01 : f32
    %19 = vector.broadcast %cst_9 : f32 to vector<32x512xf32>
    %20 = arith.addf %18, %19 : vector<32x512xf32>
    %21 = arith.mulf %13, %20 : vector<32x512xf32>
    %c0_i32 = arith.constant 0 : i32
    %22 = arith.index_cast %c0_i32 : i32 to index
    %c0_10 = arith.constant 0 : index
    %c0_11 = arith.constant 0 : index
    %23 = vector.load %arg4[%22, %c0_10, %c0_11] : memref<2x32x32xf32, #tpu.memory_space<vmem>>, vector<1x32x32xf32>
    %24 = vector.shape_cast %23 : vector<1x32x32xf32> to vector<32x32xf32>
    %cst_12 = arith.constant dense<0.000000e+00> : vector<32x512xf32>
    %25 = tpu.matmul %24, %21, %cst_12 {dimension_numbers = #tpu.dot_dimension_numbers<[1], [0], [0], [1], [0, 0, 1, 1], [], []>} : vector<32x32xf32>, vector<32x512xf32>, vector<32x512xf32> -> vector<32x512xf32>
    %26 = arith.index_cast %c0_i32 : i32 to index
    %c0_13 = arith.constant 0 : index
    %c0_14 = arith.constant 0 : index
    %27 = vector.load %arg5[%26, %c0_13, %c0_14] : memref<2x32x1xf32, #tpu.memory_space<vmem>>, vector<1x32x1xf32>
    %28 = vector.shape_cast %27 : vector<1x32x1xf32> to vector<32x1xf32>
    %29 = vector.broadcast %28 : vector<32x1xf32> to vector<32x512xf32>
    %30 = arith.addf %25, %29 : vector<32x512xf32>
    %cst_15 = arith.constant 5.000000e-01 : f32
    %31 = vector.broadcast %cst_15 : f32 to vector<32x512xf32>
    %32 = arith.mulf %31, %30 : vector<32x512xf32>
    %33 = math.tanh %32 : vector<32x512xf32>
    %cst_16 = arith.constant 5.000000e-01 : f32
    %34 = vector.broadcast %cst_16 : f32 to vector<32x512xf32>
    %35 = arith.mulf %34, %33 : vector<32x512xf32>
    %cst_17 = arith.constant 5.000000e-01 : f32
    %36 = vector.broadcast %cst_17 : f32 to vector<32x512xf32>
    %37 = arith.addf %35, %36 : vector<32x512xf32>
    %38 = arith.mulf %30, %37 : vector<32x512xf32>
    %c1_i32 = arith.constant 1 : i32
    %39 = arith.index_cast %c1_i32 : i32 to index
    %c0_18 = arith.constant 0 : index
    %c0_19 = arith.constant 0 : index
    %40 = vector.load %arg4[%39, %c0_18, %c0_19] : memref<2x32x32xf32, #tpu.memory_space<vmem>>, vector<1x32x32xf32>
    %41 = vector.shape_cast %40 : vector<1x32x32xf32> to vector<32x32xf32>
    %cst_20 = arith.constant dense<0.000000e+00> : vector<32x512xf32>
    %42 = tpu.matmul %41, %38, %cst_20 {dimension_numbers = #tpu.dot_dimension_numbers<[1], [0], [0], [1], [0, 0, 1, 1], [], []>} : vector<32x32xf32>, vector<32x512xf32>, vector<32x512xf32> -> vector<32x512xf32>
    %43 = arith.index_cast %c1_i32 : i32 to index
    %c0_21 = arith.constant 0 : index
    %c0_22 = arith.constant 0 : index
    %44 = vector.load %arg5[%43, %c0_21, %c0_22] : memref<2x32x1xf32, #tpu.memory_space<vmem>>, vector<1x32x1xf32>
    %45 = vector.shape_cast %44 : vector<1x32x1xf32> to vector<32x1xf32>
    %46 = vector.broadcast %45 : vector<32x1xf32> to vector<32x512xf32>
    %47 = arith.addf %42, %46 : vector<32x512xf32>
    %cst_23 = arith.constant 5.000000e-01 : f32
    %48 = vector.broadcast %cst_23 : f32 to vector<32x512xf32>
    %49 = arith.mulf %48, %47 : vector<32x512xf32>
    %50 = math.tanh %49 : vector<32x512xf32>
    %cst_24 = arith.constant 5.000000e-01 : f32
    %51 = vector.broadcast %cst_24 : f32 to vector<32x512xf32>
    %52 = arith.mulf %51, %50 : vector<32x512xf32>
    %cst_25 = arith.constant 5.000000e-01 : f32
    %53 = vector.broadcast %cst_25 : f32 to vector<32x512xf32>
    %54 = arith.addf %52, %53 : vector<32x512xf32>
    %55 = arith.mulf %47, %54 : vector<32x512xf32>
    %c2_i32 = arith.constant 2 : i32
    %c0_26 = arith.constant 0 : index
    %c0_27 = arith.constant 0 : index
    %56 = vector.load %arg6[%c0_26, %c0_27] : memref<32x1xf32, #tpu.memory_space<vmem>>, vector<32x1xf32>
    %57 = vector.broadcast %56 : vector<32x1xf32> to vector<32x512xf32>
    %58 = arith.mulf %55, %57 : vector<32x512xf32>
    %cst_28 = arith.constant dense<0.000000e+00> : vector<512xf32>
    %59 = vector.multi_reduction <add>, %58, %cst_28 [0] : vector<32x512xf32> to vector<512xf32>
    %60 = vector.shape_cast %59 : vector<512xf32> to vector<1x512xf32>
    %c0_29 = arith.constant 0 : index
    %c0_30 = arith.constant 0 : index
    %61 = memref.load %arg7[%c0_29, %c0_30] : memref<1x1xf32, #tpu.memory_space<smem>>
    %62 = vector.broadcast %61 : f32 to vector<1x512xf32>
    %63 = arith.addf %60, %62 : vector<1x512xf32>
    %c0_31 = arith.constant 0 : index
    %c0_32 = arith.constant 0 : index
    %64 = vector.load %arg8[%c0_31, %c0_32] : memref<1x512xf32, #tpu.memory_space<vmem>>, vector<1x512xf32>
    tpu.vector_store %arg8[%c0_31, %c0_32], %63 {strides = array<i32>} : memref<1x512xf32, #tpu.memory_space<vmem>>, vector<1x512xf32>,
    return
  }
  func.func @transform_0(%arg0: i32) -> (i32, i32) {
    %c0_i32 = arith.constant 0 : i32
    %c0_i32_0 = arith.constant 0 : i32
    return %c0_i32, %arg0 : i32, i32
  }
  func.func @transform_1(%arg0: i32) -> (i32, i32) {
    %c0_i32 = arith.constant 0 : i32
    %c0_i32_0 = arith.constant 0 : i32
    %c0_i32_1 = arith.constant 0 : i32
    return %c0_i32, %c0_i32_0 : i32, i32
  }
  func.func @transform_2(%arg0: i32) -> (i32, i32) {
    %c0_i32 = arith.constant 0 : i32
    %c0_i32_0 = arith.constant 0 : i32
    %c0_i32_1 = arith.constant 0 : i32
    return %c0_i32, %c0_i32_0 : i32, i32
  }
  func.func @transform_3(%arg0: i32) -> (i32, i32, i32) {
    %c0_i32 = arith.constant 0 : i32
    %c0_i32_0 = arith.constant 0 : i32
    %c0_i32_1 = arith.constant 0 : i32
    %c0_i32_2 = arith.constant 0 : i32
    return %c0_i32, %c0_i32_0, %c0_i32_1 : i32, i32, i32
  }
  func.func @transform_4(%arg0: i32) -> (i32, i32, i32) {
    %c0_i32 = arith.constant 0 : i32
    %c0_i32_0 = arith.constant 0 : i32
    %c0_i32_1 = arith.constant 0 : i32
    %c0_i32_2 = arith.constant 0 : i32
    return %c0_i32, %c0_i32_0, %c0_i32_1 : i32, i32, i32
  }
  func.func @transform_5(%arg0: i32) -> (i32, i32) {
    %c0_i32 = arith.constant 0 : i32
    %c0_i32_0 = arith.constant 0 : i32
    %c0_i32_1 = arith.constant 0 : i32
    return %c0_i32, %c0_i32_0 : i32, i32
  }
  func.func @transform_6(%arg0: i32) -> (i32, i32) {
    %c0_i32 = arith.constant 0 : i32
    %c0_i32_0 = arith.constant 0 : i32
    %c0_i32_1 = arith.constant 0 : i32
    return %c0_i32, %c0_i32_0 : i32, i32
  }
  func.func @transform_7(%arg0: i32) -> (i32, i32) {
    %c0_i32 = arith.constant 0 : i32
    %c0_i32_0 = arith.constant 0 : i32
    return %c0_i32, %arg0 : i32, i32
  }
}

</mosaic_0001>

<bundles_post_ra>
// kernel: tpu_custom_call.1
= control target key start
LH: loop header
LB: loop body
LE: loop exit
PB: predicated region body
PF: predicated region fallthrough
CT: control target
= control target key end

     0   :  { %v1165_v2 = vmov 1   ;;  %v1166_v3 = vmov 0   ;;  %s1561_s0 = inlined_call_operand.vmem [shape: f32[2,512], index: 0, kind: input, shape index: {}]   ;;  %s1562_s1 = inlined_call_operand.vmem [shape: f32[32,2], index: 1, kind: input, shape index: {}]   ;;  %s1563_s2 = inlined_call_operand.vmem [shape: f32[32,1], index: 2, kind: input, shape index: {}]   ;;  %s1564_s3 = inlined_call_operand.vmem [shape: f32[2,32,32], index: 3, kind: input, shape index: {}]   ;;  %s1565_s4 = inlined_call_operand.vmem [shape: f32[2,32,1], index: 4, kind: input, shape index: {}]   ;;  %s1566_s5 = inlined_call_operand.vmem [shape: f32[32,1], index: 5, kind: input, shape index: {}]   ;;  %s1567_s6 = inlined_call_operand.<no memory space> [shape: f32[1,1], index: 6, kind: input, shape index: {}]   ;;  %s1568_s7 = inlined_call_operand.hbm [shape: f32[1,512], index: 7, kind: output, shape index: {}]  }
   0x1   :  { %v34_v0 = vld [vmem:[%s1562_s1 + $0x18] sm:$0xff]  ;;  %v33_v1 = vld [vmem:[%s1562_s1 + $0x10] sm:$0xff]  ;;  %1040 = vset.pattern.permute.xlu0 %v1165_v2  ;;  %1041 = vset.pattern.permute.xlu1 %v1166_v3  ;;  %v32_v4 = vld [vmem:[%s1562_s1 + $0x8] sm:$0xff] }
   0x2   :  { %105 = vperm.xlu0 %1040, %v34_v0   ;;  %47 = vperm.xlu1 %1041, %v33_v1  }
   0x6   :  { %1042 = vset.pattern.permute.xlu1 %v1165_v2  ;;  %97 = vperm.xlu0 %1040, %v32_v4  }
   0x7   :  { %101 = vperm.xlu1 %1042, %v33_v1  }
   0x8   :  { %13 = vsyncpa [#allocation4], 0  ;;  %v31_v5 = vld [vmem:[%s1562_s1] sm:$0xff]  ;;  %v164_v6 = vld [vmem:[%s1563_s2 + $0x18] sm:$0xff]  ;;  %v1167_v22 = vmov 0.0   ;;  %v56_v23 = vlaneseq  ;;  %vm309_vm0 = vcmask 261120  }
   0x9   :  { %v162_v7 = vld [vmem:[%s1563_s2 + $0x8] sm:$0xff]  ;;  %v288_v8 = vld [vmem:[%s1565_s4 + $0x18] sm:$0xff]  ;;  %v163_v9 = vld [vmem:[%s1563_s2 + $0x10] sm:$0xff]  ;;  %386 = vmatprep.mubr.f32.mxu0 %v1167_v22  ;;  %475 = vmatprep.mubr.f32.mxu1 %v1167_v22  ;;  %s1169_s9 = smov [#allocation3]  }
   0xa   :  { %1044 = vset.pattern.permute.xlu0 %v1166_v3  ;;  %v286_v10 = vld [vmem:[%s1565_s4 + $0x8] sm:$0xff]  ;;  %v161_v11 = vld [vmem:[%s1563_s2] sm:$0xff]  ;;  %v287_v13 = vld [vmem:[%s1565_s4 + $0x10] sm:$0xff]  ;;  %v1273_v24 = vshrl.u32 %v56_v23, 7  ;;  %s1002_s10 = sshll.u32 %s1169_s9, 4  ;;  %vm993_vm1 = vcmp.lt.s32.totalorder %v56_v23, 512  ;;  %s1003_s10 = int_to_ptr.vmem [resolvable:$true] %s1002_s10 }
   0xb   :  { %1043 = vset.pattern.permute.xlu1 %v1166_v3  ;;  %52 = vperm.xlu0 %1044, %v34_v0   ;;  %v1023_v12 = vld [vmem:[%s1565_s4 + $0x20] sm:$0xff]  ;;  %v1025_v14 = vld [vmem:[%s1565_s4 + $0x30] sm:$0xff]  ;;  %v1024_v17 = vld [vmem:[%s1565_s4 + $0x28] sm:$0xff]  ;;  %p1148_p1 = scmp.lt.s32.totalorder %s1003_s10, %s1003_s10 }
   0xc   :  { %42 = vperm.xlu1 %1043, %v32_v4   ;;  %v285_v15 = vld [vmem:[%s1565_s4] sm:$0xff]  ;;  %v882_v18 = vld [vmem:[%s1566_s5 + $0x10] sm:$0xff]  ;;  %v1026_v19 = vld [vmem:[%s1565_s4 + $0x38] sm:$0xff]  ;;  %v58_v27 = vsub.s32 0, %v1273_v24  ;;  %v62_v29 = vsub.s32 1, %v1273_v24  ;;  %v66_v30 = vsub.s32 2, %v1273_v24 }
   0xd   :  { %v880_v16 = vld [vmem:[%s1566_s5] sm:$0xff]  ;;  %v881_v20 = vld [vmem:[%s1566_s5 + $0x8] sm:$0xff]  ;;  %v883_v21 = vld [vmem:[%s1566_s5 + $0x18] sm:$0xff]  ;;  %v70_v31 = vsub.s32 3, %v1273_v24 }
   0xe   :  { %v1010_v28 = vld [vmem:[%s1561_s0 + $0x1] ss:$2 sm:$0xf]  ;;  %v28_v32 = vld [vmem:[%s1561_s0] ss:$2 sm:$0xf] }
   0xf   :  { %37 = vperm.xlu0 %1044, %v31_v5   ;;  %v1285_v35 = vrot.slane %v1010_v28, %v62_v29  ;;  %v59_v36 = vrot.slane %v28_v32, %v58_v27  ;;  %v1287_v37 = vrot.slane %v1010_v28, %v58_v27  ;;  %v1289_v38 = vrot.slane %v1010_v28, %v66_v30 }
  0x10   :  { %182 = vperm.xlu1 %1043, %v164_v6   ;;  %v1291_v39 = vrot.slane %v1010_v28, %v70_v31  ;;  %v63_v40 = vrot.slane %v28_v32, %v62_v29  ;;  %v67_v41 = vrot.slane %v28_v32, %v66_v30  ;;  %v1293_v42 = vrot.slane %v28_v32, %v70_v31 }
  0x13   :  { %172 = vperm.xlu0 %1044, %v162_v7  }
  0x14   :  { %1045 = vset.pattern.permute.xlu1 %v1165_v2 }
  0x15   :  { %93 = vperm.xlu1 %1045, %v31_v5  }
  0x17   :  { %306 = vperm.xlu0 %1044, %v288_v8  }
  0x19   :  { %1046 = vset.pattern.permute.xlu1 %v1166_v3 }
  0x1a   :  { %177 = vperm.xlu1 %1046, %v163_v9  }
  0x1b   :  { %296 = vperm.xlu0 %1044, %v286_v10  }
  0x1e   :  { %167 = vperm.xlu1 %1046, %v161_v11  }
  0x1f   :  { %592 = vperm.xlu0 %1044, %v1023_v12  }
  0x22   :  { %301 = vperm.xlu1 %1046, %v287_v13  }
  0x23   :  { %602 = vperm.xlu0 %1044, %v1025_v14  }
  0x26   :  { %291 = vperm.xlu1 %1046, %v285_v15  }
  0x27   :  { %886 = vperm.xlu0 %1044, %v880_v16  }
  0x2a   :  { %597 = vperm.xlu1 %1046, %v1024_v17  }
  0x2b   :  { %896 = vperm.xlu0 %1044, %v882_v18  }
  0x2e   :  { %607 = vperm.xlu1 %1046, %v1026_v19  }
  0x32   :  { %891 = vperm.xlu1 %1046, %v881_v20  }
  0x36   :  { %901 = vperm.xlu1 %1046, %v883_v21  }
  0x7d   :  { %v48_v25 = vpop.permute.xlu1 %47  ;;  %v106_v26 = vpop.permute.xlu0 %105 }
  0x7e   :  { %v142_v43 = vmul.f32 %v1285_v35, %v106_v26  ;;  %v141_v44 = vmul.f32 %v1287_v37, %v106_v26  ;;  %v143_v45 = vmul.f32 %v1289_v38, %v106_v26  ;;  %v144_v46 = vmul.f32 %v1291_v39, %v106_v26 }
  0x7f   :  { %v84_v62 = vmul.f32 %v59_v36, %v48_v25  ;;  %v85_v3 = vmul.f32 %v63_v40, %v48_v25  ;;  %v86_v4 = vmul.f32 %v67_v41, %v48_v25  ;;  %v87_v5 = vmul.f32 %v1293_v42, %v48_v25 }
  0x81   :  { %v98_v33 = vpop.permute.xlu0 %97 }
  0x82   :  { %v102_v34 = vpop.permute.xlu1 %101  ;;  %v133_v47 = vmul.f32 %v1287_v37, %v98_v33  ;;  %v134_v49 = vmul.f32 %v1285_v35, %v98_v33  ;;  %v135_v50 = vmul.f32 %v1289_v38, %v98_v33  ;;  %v136_v54 = vmul.f32 %v1291_v39, %v98_v33 }
  0x83   :  { %v137_v63 = vmul.f32 %v1287_v37, %v102_v34  ;;  %v138_v0 = vmul.f32 %v1285_v35, %v102_v34  ;;  %v139_v6 = vmul.f32 %v1289_v38, %v102_v34  ;;  %v140_v8 = vmul.f32 %v1291_v39, %v102_v34 }
  0x85   :  { %v153_v17 = vadd.f32 %v137_v63, %v84_v62  ;;  %v154_v18 = vadd.f32 %v138_v0, %v85_v3  ;;  %v155_v30 = vadd.f32 %v139_v6, %v86_v4 }
  0x86   :  { %v53_v48 = vpop.permute.xlu0 %52 }
  0x87   :  { %v89_v51 = vmul.f32 %v63_v40, %v53_v48  ;;  %v91_v52 = vmul.f32 %v1293_v42, %v53_v48  ;;  %v43_v53 = vpop.permute.xlu1 %42  ;;  %v88_v55 = vmul.f32 %v59_v36, %v53_v48  ;;  %v90_v56 = vmul.f32 %v67_v41, %v53_v48 }
  0x88   :  { %v80_v57 = vmul.f32 %v59_v36, %v43_v53  ;;  %v81_v58 = vmul.f32 %v63_v40, %v43_v53  ;;  %v82_v59 = vmul.f32 %v67_v41, %v43_v53  ;;  %v83_v60 = vmul.f32 %v1293_v42, %v43_v53 }
  0x89   :  { %v158_v61 = vadd.f32 %v142_v43, %v89_v51  ;;  %v160_v2 = vadd.f32 %v144_v46, %v91_v52  ;;  %v157_v10 = vadd.f32 %v141_v44, %v88_v55  ;;  %v159_v11 = vadd.f32 %v143_v45, %v90_v56 }
  0x8a   :  { %v38_v1 = vpop.permute.xlu0 %37  ;;  %v149_v12 = vadd.f32 %v133_v47, %v80_v57  ;;  %v150_v13 = vadd.f32 %v134_v49, %v81_v58  ;;  %v151_v14 = vadd.f32 %v135_v50, %v82_v59  ;;  %v152_v15 = vadd.f32 %v136_v54, %v83_v60 }
  0x8b   :  { %v183_v7 = vpop.permute.xlu1 %182  ;;  %v76_v28 = vmul.f32 %v59_v36, %v38_v1  ;;  %v77_v44 = vmul.f32 %v63_v40, %v38_v1  ;;  %v78_v45 = vmul.f32 %v67_v41, %v38_v1  ;;  %v79_v50 = vmul.f32 %v1293_v42, %v38_v1 }
  0x8c   :  { %v1310_v9 = vadd.f32 %v183_v7, %v158_v61  ;;  %v1313_v20 = vadd.f32 %v183_v7, %v160_v2  ;;  %v1323_v31 = vadd.f32 %v183_v7, %v157_v10  ;;  %v1328_v43 = vadd.f32 %v183_v7, %v159_v11 }
  0x8d   :  { %v156_v51 = vadd.f32 %v140_v8, %v87_v5 }
  0x8e   :  { %v173_v16 = vpop.permute.xlu0 %172  ;;  %v214_v19 = vmul.f32 0.5, %v1310_v9  ;;  %v216_v49 = vmul.f32 0.5, %v1313_v20  ;;  %v213_v52 = vmul.f32 0.5, %v1323_v31 }
  0x8f   :  { %v1315_v21 = vadd.f32 %v173_v16, %v149_v12  ;;  %v1317_v25 = vadd.f32 %v173_v16, %v150_v13  ;;  %v1319_v26 = vadd.f32 %v173_v16, %v151_v14  ;;  %v1321_v27 = vadd.f32 %v173_v16, %v152_v15 }
  0x90   :  { %v94_v29 = vpop.permute.xlu1 %93  ;;  %1047 = vtanh.f32 %v214_v19 }
  0x91   :  { %v205_v32 = vmul.f32 0.5, %v1315_v21  ;;  %v206_v33 = vmul.f32 0.5, %v1317_v25  ;;  %v207_v34 = vmul.f32 0.5, %v1319_v26  ;;  %v208_v46 = vmul.f32 0.5, %v1321_v27 }
  0x92   :  { %v129_v47 = vmul.f32 %v1287_v37, %v94_v29  ;;  %v130_v36 = vmul.f32 %v1285_v35, %v94_v29  ;;  %v131_v48 = vmul.f32 %v1289_v38, %v94_v29  ;;  %v132_v40 = vmul.f32 %v1291_v39, %v94_v29 }
  0x93   :  { %1049 = vtanh.f32 %v205_v32  ;;  %v215_v37 = vmul.f32 0.5, %v1328_v43 }
  0x94   :  { %1051 = vtanh.f32 %v206_v33  ;;  %v145_v53 = vadd.f32 %v129_v47, %v76_v28  ;;  %v146_v42 = vadd.f32 %v130_v36, %v77_v44  ;;  %v147_v56 = vadd.f32 %v131_v48, %v78_v45 }
  0x95   :  { %1053 = vtanh.f32 %v207_v34  ;;  %v178_v41 = vpop.permute.xlu1 %177  ;;  %v148_v61 = vadd.f32 %v132_v40, %v79_v50 }
  0x96   :  { %1055 = vtanh.f32 %v208_v46  ;;  %v1339_v54 = vadd.f32 %v178_v41, %v153_v17  ;;  %v1341_v35 = vadd.f32 %v178_v41, %v154_v18  ;;  %v1343_v38 = vadd.f32 %v178_v41, %v155_v30 }
  0x97   :  { %v1345_v55 = vadd.f32 %v178_v41, %v156_v51  ;;  %1057 = vtanh.f32 %v216_v49 }
  0x98   :  { %v209_v57 = vmul.f32 0.5, %v1339_v54  ;;  %v210_v39 = vmul.f32 0.5, %v1341_v35  ;;  %v211_v58 = vmul.f32 0.5, %v1343_v38  ;;  %1059 = vtanh.f32 %v213_v52 }
  0x99   :  { %v212_v59 = vmul.f32 0.5, %v1345_v55  ;;  %v168_v60 = vpop.permute.xlu1 %167  ;;  %1061 = vtanh.f32 %v215_v37 }
  0x9a   :  { %1063 = vtanh.f32 %v209_v57  ;;  %v1351_v62 = vadd.f32 %v168_v60, %v145_v53  ;;  %v1353_v63 = vadd.f32 %v168_v60, %v146_v42  ;;  %v1355_v0 = vadd.f32 %v168_v60, %v147_v56 }
  0x9b   :  { %1065 = vtanh.f32 %v210_v39  ;;  %v1357_v1 = vadd.f32 %v168_v60, %v148_v61 }
  0x9c   :  { %1067 = vtanh.f32 %v211_v58  ;;  %v201_v2 = vmul.f32 0.5, %v1351_v62  ;;  %v202_v3 = vmul.f32 0.5, %v1353_v63  ;;  %v203_v4 = vmul.f32 0.5, %v1355_v0 }
  0x9d   :  { %v1048_v5 = vpop.eup %1047  ;;  %1069 = vtanh.f32 %v212_v59  ;;  %v204_v6 = vmul.f32 0.5, %v1357_v1 }
  0x9e   :  { %1071 = vtanh.f32 %v201_v2  ;;  %v246_v7 = vmul.f32 0.5, %v1048_v5 }
  0x9f   :  { %1073 = vtanh.f32 %v202_v3 }
  0xa0   :  { %v1050_v8 = vpop.eup %1049  ;;  %1075 = vtanh.f32 %v203_v4  ;;  %v262_v10 = vadd.f32 0.5, %v246_v7 }
  0xa1   :  { %v1052_v11 = vpop.eup %1051  ;;  %1077 = vtanh.f32 %v204_v6  ;;  %v237_v45 = vmul.f32 0.5, %v1050_v8 }
  0xa2   :  { %v1054_v12 = vpop.eup %1053  ;;  %v278_v13 = vmul.f32 %v262_v10, %v1310_v9  ;;  %v238_v32 = vmul.f32 0.5, %v1052_v11 }
  0xa3   :  { %v1056_v14 = vpop.eup %1055  ;;  %v239_v40 = vmul.f32 0.5, %v1054_v12  ;;  %v253_v58 = vadd.f32 0.5, %v237_v45 }
  0xa4   :  { %v1058_v15 = vpop.eup %1057  ;;  %346 = vmatprep.subr.mxu0 %v278_v13  ;;  %v240_v48 = vmul.f32 0.5, %v1056_v14  ;;  %v254_v56 = vadd.f32 0.5, %v238_v32 }
  0xa5   :  { %v1060_v16 = vpop.eup %1059  ;;  %v248_v17 = vmul.f32 0.5, %v1058_v15  ;;  %v255_v5 = vadd.f32 0.5, %v239_v40  ;;  %v269_v12 = vmul.f32 %v253_v58, %v1315_v21  ;;  %v281_v21 = vld [vmem:[%s1564_s3] sm:$0xff] }
  0xa6   :  { %v1062_v18 = vpop.eup %1061  ;;  %v245_v19 = vmul.f32 0.5, %v1060_v16  ;;  %v256_v2 = vadd.f32 0.5, %v240_v48 }
  0xa7   :  { %v1064_v28 = vpop.eup %1063  ;;  %v264_v29 = vadd.f32 0.5, %v248_v17  ;;  %v247_v30 = vmul.f32 0.5, %v1062_v18 }
  0xa8   :  { %v1066_v33 = vpop.eup %1065  ;;  %v261_v34 = vadd.f32 0.5, %v245_v19  ;;  %v241_v44 = vmul.f32 0.5, %v1064_v28 }
  0xa9   :  { %v1068_v46 = vpop.eup %1067  ;;  %v280_v47 = vmul.f32 %v264_v29, %v1313_v20  ;;  %v263_v36 = vadd.f32 0.5, %v247_v30  ;;  %v242_v9 = vmul.f32 0.5, %v1066_v33 }
  0xaa   :  { %v1070_v49 = vpop.eup %1069  ;;  %v277_v50 = vmul.f32 %v261_v34, %v1323_v31  ;;  %v257_v51 = vadd.f32 0.5, %v241_v44  ;;  %v243_v52 = vmul.f32 0.5, %v1068_v46 }
  0xab   :  { %v1072_v41 = vpop.eup %1071  ;;  %435 = vmatprep.subr.mxu1 %v280_v47  ;;  %v279_v53 = vmul.f32 %v263_v36, %v1328_v43  ;;  %v258_v37 = vadd.f32 0.5, %v242_v9  ;;  %v244_v42 = vmul.f32 0.5, %v1070_v49 }
  0xac   :  { %v1074_v57 = vpop.eup %1073  ;;  %347 = vmatpush1.msra.mxu0 %v277_v50  ;;  %v273_v20 = vmul.f32 %v257_v51, %v1339_v54  ;;  %v259_v39 = vadd.f32 0.5, %v243_v52  ;;  %v233_v59 = vmul.f32 0.5, %v1072_v41  ;;  %v270_v54 = vmul.f32 %v254_v56, %v1317_v25 }
  0xad   :  { %v1076_v60 = vpop.eup %1075  ;;  %436 = vmatpush1.msra.mxu1 %v279_v53  ;;  %v274_v31 = vmul.f32 %v258_v37, %v1341_v35  ;;  %v260_v61 = vadd.f32 0.5, %v244_v42  ;;  %v234_v3 = vmul.f32 0.5, %v1074_v57 }
  0xae   :  { %v1078_v4 = vpop.eup %1077  ;;  %v275_v43 = vmul.f32 %v259_v39, %v1343_v38  ;;  %v249_v6 = vadd.f32 0.5, %v233_v59  ;;  %v235_v7 = vmul.f32 0.5, %v1076_v60  ;;  %v272_v38 = vmul.f32 %v256_v2, %v1321_v27  ;;  %v283_v27 = vld [vmem:[%s1564_s3 + $0x10] sm:$0xff] }
  0xaf   :  { %348 = vmatprep.subr.mxu0 %v274_v31  ;;  %v276_v8 = vmul.f32 %v260_v61, %v1345_v55  ;;  %v250_v10 = vadd.f32 0.5, %v234_v3  ;;  %v236_v11 = vmul.f32 0.5, %v1078_v4  ;;  %v271_v55 = vmul.f32 %v255_v5, %v1319_v26  ;;  %v282_v26 = vld [vmem:[%s1564_s3 + $0x8] sm:$0xff] }
  0xb0   :  { %349 = vmatpush1.msra.mxu0 %v273_v20  ;;  %v265_v35 = vmul.f32 %v249_v6, %v1351_v62  ;;  %v251_v13 = vadd.f32 0.5, %v235_v7 }
  0xb1   :  { %437 = vmatprep.subr.mxu1 %v276_v8  ;;  %350 = vmatprep.subr.mxu0 %v270_v54  ;;  %v266_v14 = vmul.f32 %v250_v10, %v1353_v63  ;;  %v252_v15 = vadd.f32 0.5, %v236_v11  ;;  %v284_v63 = vld [vmem:[%s1564_s3 + $0x18] sm:$0xff] }
  0xb2   :  { %438 = vmatpush1.msra.mxu1 %v275_v43  ;;  %351 = vmatpush1.msra.mxu0 %v269_v12  ;;  %v267_v25 = vmul.f32 %v251_v13, %v1355_v0  ;;  %v302_v0 = vpop.permute.xlu1 %301 }
  0xb3   :  { %439 = vmatprep.subr.mxu1 %v272_v38  ;;  %352 = vmatprep.subr.mxu0 %v266_v14  ;;  %v268_v62 = vmul.f32 %v252_v15, %v1357_v1  ;;  %v307_v1 = vpop.permute.xlu0 %306 }
  0xb4   :  { %440 = vmatpush1.msra.mxu1 %v271_v55  ;;  %353 = vmatpush1.msra.mxu0 %v265_v35 }
  0xb5   :  { %441 = vmatprep.subr.mxu1 %v268_v62  ;;  %1011 = vmatmul.mubr.msk.f32.vlgmr.msra.gmra.mxu0 %vm309_vm0, %v281_v21 }
  0xb6   :  { %442 = vmatpush1.msra.mxu1 %v267_v25  ;;  %392 = vmatprep.mubr.f32.mxu0 %v1167_v22  ;;  %v292_v16 = vpop.permute.xlu1 %291 }
  0xb7   :  { %1015 = vmatmul.mubr.msk.f32.vlgmr.msra.gmra.mxu1 %vm309_vm0, %v281_v21  ;;  %v297_v34 = vpop.permute.xlu0 %296 }
  0xb8   :  { %481 = vmatprep.mubr.f32.mxu1 %v1167_v22 }
  0xb9   :  { %1012 = vmatmul.mubr.msk.f32.gmra.mxu0 %vm309_vm0, %v282_v26 }
  0xba   :  { %398 = vmatprep.mubr.f32.mxu0 %v1167_v22 }
  0xbb   :  { %1016 = vmatmul.mubr.msk.f32.gmra.mxu1 %vm309_vm0, %v282_v26 }
  0xbc   :  { %487 = vmatprep.mubr.f32.mxu1 %v1167_v22 }
  0xbd   :  { %1013 = vmatmul.mubr.msk.f32.gmra.mxu0 %vm309_vm0, %v283_v27 }
  0xbe   :  { %404 = vmatprep.mubr.f32.mxu0 %v1167_v22 }
  0xbf   :  { %1017 = vmatmul.mubr.msk.f32.gmra.mxu1 %vm309_vm0, %v283_v27 }
  0xc0   :  { %493 = vmatprep.mubr.f32.mxu1 %v1167_v22 }
  0xc1   :  { %1014 = vmatmul.mubr.msk.f32.gmra.mxu0 %vm309_vm0, %v284_v63 }
  0xc2   :  { %686 = vmatprep.mubr.f32.mxu0 %v1167_v22 }
  0xc3   :  { %1018 = vmatmul.mubr.msk.f32.gmra.mxu1 %vm309_vm0, %v284_v63 }
  0xc4   :  { %775 = vmatprep.mubr.f32.mxu1 %v1167_v22 }
 0x175   :  { %v388_v17 = vpop.f32.mrf.mxu0 }
 0x176   :  { %v1407_v18 = vadd.f32 %v388_v17, %v292_v16 }
 0x177   :  { %v477_v19 = vpop.f32.mrf.mxu1  ;;  %v390_v28 = vpop.f32.mrf.mxu0 }
 0x178   :  { %v500_v29 = vmul.f32 0.5, %v1407_v18  ;;  %v1410_v30 = vadd.f32 %v390_v28, %v292_v16  ;;  %v1439_v3 = vadd.f32 %v477_v19, %v292_v16 }
 0x179   :  { %v479_v32 = vpop.f32.mrf.mxu1  ;;  %v394_v33 = vpop.f32.mrf.mxu0 }
 0x17a   :  { %v501_v44 = vmul.f32 0.5, %v1410_v30  ;;  %v1413_v45 = vadd.f32 %v479_v32, %v292_v16  ;;  %v1415_v46 = vadd.f32 %v394_v33, %v297_v34  ;;  %1079 = vtanh.f32 %v500_v29 }
 0x17b   :  { %v483_v47 = vpop.f32.mrf.mxu1  ;;  %v396_v36 = vpop.f32.mrf.mxu0  ;;  %v502_v13 = vmul.f32 0.5, %v1439_v3 }
 0x17c   :  { %v503_v9 = vmul.f32 0.5, %v1413_v45  ;;  %v1418_v48 = vadd.f32 %v483_v47, %v297_v34  ;;  %v1420_v49 = vadd.f32 %v396_v36, %v297_v34  ;;  %1081 = vtanh.f32 %v501_v44 }
 0x17d   :  { %v504_v50 = vmul.f32 0.5, %v1415_v46  ;;  %v485_v51 = vpop.f32.mrf.mxu1  ;;  %v400_v52 = vpop.f32.mrf.mxu0 }
 0x17e   :  { %1083 = vtanh.f32 %v503_v9  ;;  %v506_v40 = vmul.f32 0.5, %v1418_v48  ;;  %v505_v41 = vmul.f32 0.5, %v1420_v49  ;;  %v1425_v53 = vadd.f32 %v485_v51, %v297_v34 }
 0x17f   :  { %1085 = vtanh.f32 %v504_v50  ;;  %v1427_v37 = vadd.f32 %v400_v52, %v302_v0  ;;  %v489_v42 = vpop.f32.mrf.mxu1  ;;  %v402_v56 = vpop.f32.mrf.mxu0 }
 0x180   :  { %1087 = vtanh.f32 %v506_v40  ;;  %v507_v57 = vmul.f32 0.5, %v1425_v53  ;;  %v1430_v20 = vadd.f32 %v489_v42, %v302_v0  ;;  %v1432_v39 = vadd.f32 %v402_v56, %v302_v0 }
 0x181   :  { %1089 = vtanh.f32 %v505_v41  ;;  %v508_v58 = vmul.f32 0.5, %v1427_v37  ;;  %v491_v59 = vpop.f32.mrf.mxu1  ;;  %v406_v60 = vpop.f32.mrf.mxu0 }
 0x182   :  { %1091 = vtanh.f32 %v507_v57  ;;  %v510_v31 = vmul.f32 0.5, %v1430_v20  ;;  %v509_v61 = vmul.f32 0.5, %v1432_v39  ;;  %v1437_v2 = vadd.f32 %v491_v59, %v302_v0 }
 0x183   :  { %1093 = vtanh.f32 %v508_v58  ;;  %v1441_v4 = vadd.f32 %v406_v60, %v307_v1  ;;  %v495_v43 = vpop.f32.mrf.mxu1  ;;  %v408_v5 = vpop.f32.mrf.mxu0 }
 0x184   :  { %1095 = vtanh.f32 %v510_v31  ;;  %v511_v6 = vmul.f32 0.5, %v1437_v2  ;;  %v1444_v7 = vadd.f32 %v495_v43, %v307_v1  ;;  %v409_v8 = vadd.f32 %v408_v5, %v307_v1 }
 0x185   :  { %1097 = vtanh.f32 %v509_v61  ;;  %v512_v54 = vmul.f32 0.5, %v1441_v4  ;;  %v497_v10 = vpop.f32.mrf.mxu1 }
 0x186   :  { %1099 = vtanh.f32 %v511_v6  ;;  %v514_v11 = vmul.f32 0.5, %v1444_v7  ;;  %v513_v12 = vmul.f32 0.5, %v409_v8  ;;  %v498_v35 = vadd.f32 %v497_v10, %v307_v1 }
 0x187   :  { %1101 = vtanh.f32 %v512_v54  ;;  %v1080_v14 = vpop.eup %1079 }
 0x188   :  { %1103 = vtanh.f32 %v514_v11  ;;  %v515_v38 = vmul.f32 0.5, %v498_v35  ;;  %v532_v32 = vmul.f32 0.5, %v1080_v14 }
 0x189   :  { %1105 = vtanh.f32 %v513_v12  ;;  %v1082_v15 = vpop.eup %1081 }
 0x18a   :  { %1107 = vtanh.f32 %v515_v38  ;;  %v533_v36 = vmul.f32 0.5, %v1082_v15 }
 0x18b   :  { %v1084_v55 = vpop.eup %1083  ;;  %1109 = vtanh.f32 %v502_v13 }
 0x18c   :  { %v1086_v25 = vpop.eup %1085  ;;  %v535_v31 = vmul.f32 0.5, %v1084_v55  ;;  %v549_v15 = vadd.f32 0.5, %v533_v36  ;;  %v548_v55 = vadd.f32 0.5, %v532_v32  ;;  %v598_v32 = vpop.permute.xlu1 %597 }
 0x18d   :  { %v1088_v21 = vpop.eup %1087  ;;  %v536_v40 = vmul.f32 0.5, %v1086_v25 }
 0x18e   :  { %v1090_v62 = vpop.eup %1089  ;;  %v538_v57 = vmul.f32 0.5, %v1088_v21 }
 0x18f   :  { %v1092_v26 = vpop.eup %1091  ;;  %v537_v9 = vmul.f32 0.5, %v1090_v62  ;;  %v552_v12 = vadd.f32 0.5, %v536_v40 }
 0x190   :  { %v1094_v27 = vpop.eup %1093  ;;  %v539_v41 = vmul.f32 0.5, %v1092_v26  ;;  %v554_v25 = vadd.f32 0.5, %v538_v57  ;;  %v551_v26 = vadd.f32 0.5, %v535_v31 }
 0x191   :  { %v1096_v63 = vpop.eup %1095  ;;  %v540_v33 = vmul.f32 0.5, %v1094_v27  ;;  %v553_v54 = vadd.f32 0.5, %v537_v9 }
 0x192   :  { %v1098_v0 = vpop.eup %1097  ;;  %v542_v50 = vmul.f32 0.5, %v1096_v63  ;;  %v555_v13 = vadd.f32 0.5, %v539_v41 }
 0x193   :  { %v1100_v16 = vpop.eup %1099  ;;  %v541_v19 = vmul.f32 0.5, %v1098_v0  ;;  %v556_v61 = vadd.f32 0.5, %v540_v33  ;;  %v569_v0 = vmul.f32 %v553_v54, %v1420_v49  ;;  %v567_v49 = vmul.f32 %v551_v26, %v1413_v45  ;;  %v1022_v45 = vld [vmem:[%s1564_s3 + $0x38] sm:$0xff] }
 0x194   :  { %v1102_v1 = vpop.eup %1101  ;;  %v543_v34 = vmul.f32 0.5, %v1100_v16  ;;  %v558_v10 = vadd.f32 0.5, %v542_v50 }
 0x195   :  { %v1104_v17 = vpop.eup %1103  ;;  %v544_v28 = vmul.f32 0.5, %v1102_v1  ;;  %v557_v58 = vadd.f32 0.5, %v541_v19  ;;  %v572_v27 = vmul.f32 %v556_v61, %v1427_v37  ;;  %v570_v37 = vmul.f32 %v554_v25, %v1418_v48  ;;  %v593_v48 = vpop.permute.xlu0 %592 }
 0x196   :  { %v1106_v29 = vpop.eup %1105  ;;  %v546_v44 = vmul.f32 0.5, %v1104_v17  ;;  %v559_v43 = vadd.f32 0.5, %v543_v34 }
 0x197   :  { %v1108_v47 = vpop.eup %1107  ;;  %v545_v51 = vmul.f32 0.5, %v1106_v29  ;;  %v560_v42 = vadd.f32 0.5, %v544_v28  ;;  %v573_v21 = vmul.f32 %v557_v58, %v1432_v39  ;;  %v568_v39 = vmul.f32 %v552_v12, %v1415_v46  ;;  %v1019_v46 = vld [vmem:[%s1564_s3 + $0x20] sm:$0xff] }
 0x198   :  { %v1110_v52 = vpop.eup %1109  ;;  %v547_v56 = vmul.f32 0.5, %v1108_v47  ;;  %v562_v59 = vadd.f32 0.5, %v546_v44  ;;  %v575_v63 = vmul.f32 %v559_v43, %v1437_v2  ;;  %v564_v2 = vmul.f32 %v548_v55, %v1407_v18  ;;  %v1020_v18 = vld [vmem:[%s1564_s3 + $0x28] sm:$0xff] }
 0x199   :  { %v561_v60 = vadd.f32 0.5, %v545_v51  ;;  %v534_v6 = vmul.f32 0.5, %v1110_v52  ;;  %v576_v38 = vmul.f32 %v560_v42, %v1441_v4  ;;  %v574_v4 = vmul.f32 %v558_v10, %v1430_v20  ;;  %v603_v42 = vpop.permute.xlu0 %602 }
 0x19a   :  { %v563_v5 = vadd.f32 0.5, %v547_v56  ;;  %v578_v62 = vmul.f32 %v562_v59, %v1444_v7  ;;  %v571_v7 = vmul.f32 %v555_v13, %v1425_v53 }
 0x19b   :  { %v577_v11 = vmul.f32 %v561_v60, %v409_v8  ;;  %v550_v8 = vadd.f32 0.5, %v534_v6 }
 0x19c   :  { %v579_v14 = vmul.f32 %v563_v5, %v498_v35  ;;  %v565_v35 = vmul.f32 %v549_v15, %v1410_v30  ;;  %v1021_v30 = vld [vmem:[%s1564_s3 + $0x30] sm:$0xff] }
 0x19d   :  { %646 = vmatprep.subr.mxu0 %v577_v11  ;;  %v566_v53 = vmul.f32 %v550_v8, %v1439_v3  ;;  %v608_v11 = vpop.permute.xlu1 %607 }
 0x19e   :  { %735 = vmatprep.subr.mxu1 %v579_v14  ;;  %647 = vmatpush1.msra.mxu0 %v576_v38 }
 0x19f   :  { %736 = vmatpush1.msra.mxu1 %v578_v62  ;;  %648 = vmatprep.subr.mxu0 %v573_v21 }
 0x1a0   :  { %737 = vmatprep.subr.mxu1 %v575_v63  ;;  %649 = vmatpush1.msra.mxu0 %v572_v27 }
 0x1a1   :  { %738 = vmatpush1.msra.mxu1 %v574_v4  ;;  %650 = vmatprep.subr.mxu0 %v569_v0 }
 0x1a2   :  { %739 = vmatprep.subr.mxu1 %v571_v7  ;;  %651 = vmatpush1.msra.mxu0 %v568_v39 }
 0x1a3   :  { %740 = vmatpush1.msra.mxu1 %v570_v37  ;;  %652 = vmatprep.subr.mxu0 %v565_v35 }
 0x1a4   :  { %741 = vmatprep.subr.mxu1 %v567_v49  ;;  %653 = vmatpush1.msra.mxu0 %v564_v2 }
 0x1a5   :  { %742 = vmatpush1.msra.mxu1 %v566_v53  ;;  %1027 = vmatmul.mubr.msk.f32.vlgmr.msra.gmra.mxu0 %vm309_vm0, %v1019_v46 }
 0x1a6   :  { %1031 = vmatmul.mubr.msk.f32.vlgmr.msra.gmra.mxu1 %vm309_vm0, %v1019_v46  ;;  %692 = vmatprep.mubr.f32.mxu0 %v1167_v22 }
 0x1a7   :  { %781 = vmatprep.mubr.f32.mxu1 %v1167_v22 }
 0x1a9   :  { %1028 = vmatmul.mubr.msk.f32.gmra.mxu0 %vm309_vm0, %v1020_v18 }
 0x1aa   :  { %1032 = vmatmul.mubr.msk.f32.gmra.mxu1 %vm309_vm0, %v1020_v18  ;;  %698 = vmatprep.mubr.f32.mxu0 %v1167_v22 }
 0x1ab   :  { %787 = vmatprep.mubr.f32.mxu1 %v1167_v22 }
 0x1ad   :  { %1029 = vmatmul.mubr.msk.f32.gmra.mxu0 %vm309_vm0, %v1021_v30 }
 0x1ae   :  { %1033 = vmatmul.mubr.msk.f32.gmra.mxu1 %vm309_vm0, %v1021_v30  ;;  %704 = vmatprep.mubr.f32.mxu0 %v1167_v22 }
 0x1af   :  { %793 = vmatprep.mubr.f32.mxu1 %v1167_v22 }
 0x1b1   :  { %1030 = vmatmul.mubr.msk.f32.gmra.mxu0 %vm309_vm0, %v1022_v45 }
 0x1b2   :  { %1034 = vmatmul.mubr.msk.f32.gmra.mxu1 %vm309_vm0, %v1022_v45 }
 0x265   :  { %v688_v20 = vpop.f32.mrf.mxu0 }
 0x266   :  { %v1489_v3 = vadd.f32 %v688_v20, %v593_v48  ;;  %v777_v16 = vpop.f32.mrf.mxu1 }
 0x267   :  { %v1491_v1 = vadd.f32 %v777_v16, %v593_v48  ;;  %v690_v17 = vpop.f32.mrf.mxu0 }
 0x268   :  { %v800_v19 = vmul.f32 0.5, %v1489_v3  ;;  %v1494_v28 = vadd.f32 %v690_v17, %v593_v48  ;;  %v779_v29 = vpop.f32.mrf.mxu1 }
 0x269   :  { %v802_v22 = vmul.f32 0.5, %v1491_v1  ;;  %v1497_v33 = vadd.f32 %v779_v29, %v593_v48  ;;  %v694_v34 = vpop.f32.mrf.mxu0 }
 0x26a   :  { %1111 = vtanh.f32 %v800_v19  ;;  %v801_v44 = vmul.f32 0.5, %v1494_v28  ;;  %v1500_v47 = vadd.f32 %v694_v34, %v598_v32  ;;  %v783_v36 = vpop.f32.mrf.mxu1 }
 0x26b   :  { %1113 = vtanh.f32 %v802_v22  ;;  %v803_v9 = vmul.f32 0.5, %v1497_v33  ;;  %v1503_v50 = vadd.f32 %v783_v36, %v598_v32  ;;  %v696_v51 = vpop.f32.mrf.mxu0 }
 0x26c   :  { %1115 = vtanh.f32 %v801_v44  ;;  %v804_v52 = vmul.f32 0.5, %v1500_v47  ;;  %v1506_v40 = vadd.f32 %v696_v51, %v598_v32  ;;  %v785_v41 = vpop.f32.mrf.mxu1 }
 0x26d   :  { %1117 = vtanh.f32 %v803_v9  ;;  %v806_v56 = vmul.f32 0.5, %v1503_v50  ;;  %v1509_v57 = vadd.f32 %v785_v41, %v598_v32  ;;  %v700_v58 = vpop.f32.mrf.mxu0 }
 0x26e   :  { %1119 = vtanh.f32 %v804_v52  ;;  %v805_v59 = vmul.f32 0.5, %v1506_v40  ;;  %v1512_v60 = vadd.f32 %v700_v58, %v603_v42  ;;  %v789_v31 = vpop.f32.mrf.mxu1 }
 0x26f   :  { %1121 = vtanh.f32 %v806_v56  ;;  %v807_v61 = vmul.f32 0.5, %v1509_v57  ;;  %v1515_v43 = vadd.f32 %v789_v31, %v603_v42  ;;  %v702_v5 = vpop.f32.mrf.mxu0 }
 0x270   :  { %1123 = vtanh.f32 %v805_v59  ;;  %v808_v6 = vmul.f32 0.5, %v1512_v60  ;;  %v1518_v54 = vadd.f32 %v702_v5, %v603_v42  ;;  %v791_v10 = vpop.f32.mrf.mxu1  ;;  %v887_v59 = vpop.permute.xlu0 %886 }
 0x271   :  { %1125 = vtanh.f32 %v807_v61  ;;  %v810_v12 = vmul.f32 0.5, %v1515_v43  ;;  %v1521_v13 = vadd.f32 %v791_v10, %v603_v42  ;;  %v706_v38 = vpop.f32.mrf.mxu0 }
 0x272   :  { %1127 = vtanh.f32 %v808_v6  ;;  %v809_v14 = vmul.f32 0.5, %v1518_v54  ;;  %v1524_v15 = vadd.f32 %v706_v38, %v608_v11  ;;  %v795_v25 = vpop.f32.mrf.mxu1 }
 0x273   :  { %1129 = vtanh.f32 %v810_v12  ;;  %v811_v21 = vmul.f32 0.5, %v1521_v13  ;;  %v1527_v62 = vadd.f32 %v795_v25, %v608_v11  ;;  %v708_v55 = vpop.f32.mrf.mxu0 }
 0x274   :  { %1131 = vtanh.f32 %v809_v14  ;;  %v812_v26 = vmul.f32 0.5, %v1524_v15  ;;  %v1530_v27 = vadd.f32 %v708_v55, %v608_v11  ;;  %v797_v63 = vpop.f32.mrf.mxu1 }
 0x275   :  { %1133 = vtanh.f32 %v811_v21  ;;  %v814_v8 = vmul.f32 0.5, %v1527_v62  ;;  %v1533_v0 = vadd.f32 %v797_v63, %v608_v11 }
 0x276   :  { %1135 = vtanh.f32 %v812_v26  ;;  %v813_v4 = vmul.f32 0.5, %v1530_v27 }
 0x277   :  { %v1112_v39 = vpop.eup %1111  ;;  %1137 = vtanh.f32 %v814_v8  ;;  %v815_v7 = vmul.f32 0.5, %v1533_v0 }
 0x278   :  { %v1114_v35 = vpop.eup %1113  ;;  %v832_v37 = vmul.f32 0.5, %v1112_v39  ;;  %1139 = vtanh.f32 %v813_v4 }
 0x279   :  { %v1116_v2 = vpop.eup %1115  ;;  %v834_v49 = vmul.f32 0.5, %v1114_v35  ;;  %1141 = vtanh.f32 %v815_v7 }
 0x27a   :  { %v1118_v46 = vpop.eup %1117  ;;  %v833_v53 = vmul.f32 0.5, %v1116_v2  ;;  %v848_v48 = vadd.f32 0.5, %v832_v37 }
 0x27b   :  { %v1120_v18 = vpop.eup %1119  ;;  %v835_v30 = vmul.f32 0.5, %v1118_v46  ;;  %v850_v17 = vadd.f32 0.5, %v834_v49 }
 0x27c   :  { %v1122_v45 = vpop.eup %1121  ;;  %v836_v20 = vmul.f32 0.5, %v1120_v18  ;;  %v849_v32 = vadd.f32 0.5, %v833_v53  ;;  %v864_v41 = vmul.f32 %v848_v48, %v1489_v3  ;;  %v897_v53 = vpop.permute.xlu0 %896 }
 0x27d   :  { %v1124_v16 = vpop.eup %1123  ;;  %v838_v19 = vmul.f32 0.5, %v1122_v45  ;;  %v851_v36 = vadd.f32 0.5, %v835_v30  ;;  %v866_v31 = vmul.f32 %v850_v17, %v1491_v1 }
 0x27e   :  { %v1126_v29 = vpop.eup %1125  ;;  %v852_v22 = vadd.f32 0.5, %v836_v20  ;;  %v837_v34 = vmul.f32 0.5, %v1124_v16  ;;  %v865_v10 = vmul.f32 %v849_v32, %v1494_v28  ;;  %v904_v63 = vmul.f32 %v887_v59, %v864_v41  ;;  %v892_v28 = vpop.permute.xlu1 %891 }
 0x27f   :  { %v1128_v44 = vpop.eup %1127  ;;  %v854_v9 = vadd.f32 0.5, %v838_v19  ;;  %v839_v51 = vmul.f32 0.5, %v1126_v29  ;;  %v867_v25 = vmul.f32 %v851_v36, %v1497_v33  ;;  %v906_v7 = vmul.f32 %v887_v59, %v866_v31 }
 0x280   :  { %v1130_v52 = vpop.eup %1129  ;;  %v853_v42 = vadd.f32 0.5, %v837_v34  ;;  %v840_v56 = vmul.f32 0.5, %v1128_v44  ;;  %v868_v11 = vmul.f32 %v852_v22, %v1500_v47  ;;  %v905_v2 = vmul.f32 %v887_v59, %v865_v10 }
 0x281   :  { %v1132_v58 = vpop.eup %1131  ;;  %v855_v61 = vadd.f32 0.5, %v839_v51  ;;  %v842_v5 = vmul.f32 0.5, %v1130_v52  ;;  %v870_v3 = vmul.f32 %v854_v9, %v1503_v50  ;;  %v907_v18 = vmul.f32 %v887_v59, %v867_v25 }
 0x282   :  { %v1134_v6 = vpop.eup %1133  ;;  %v856_v12 = vadd.f32 0.5, %v840_v56  ;;  %v841_v38 = vmul.f32 0.5, %v1132_v58  ;;  %v869_v1 = vmul.f32 %v853_v42, %v1506_v40  ;;  %v908_v50 = vmul.f32 %v892_v28, %v868_v11  ;;  %v902_v34 = vpop.permute.xlu1 %901 }
 0x283   :  { %v1136_v14 = vpop.eup %1135  ;;  %v858_v21 = vadd.f32 0.5, %v842_v5  ;;  %v843_v55 = vmul.f32 0.5, %v1134_v6  ;;  %v871_v47 = vmul.f32 %v855_v61, %v1509_v57  ;;  %v910_v40 = vmul.f32 %v892_v28, %v870_v3 }
 0x284   :  { %v1138_v26 = vpop.eup %1137  ;;  %v872_v8 = vmul.f32 %v856_v12, %v1512_v60  ;;  %v857_v4 = vadd.f32 0.5, %v841_v38  ;;  %v844_v46 = vmul.f32 0.5, %v1136_v14  ;;  %v909_v45 = vmul.f32 %v892_v28, %v869_v1 }
 0x285   :  { %v1140_v39 = vpop.eup %1139  ;;  %v874_v35 = vmul.f32 %v858_v21, %v1515_v43  ;;  %v859_v37 = vadd.f32 0.5, %v843_v55  ;;  %v846_v30 = vmul.f32 0.5, %v1138_v26  ;;  %v911_v57 = vmul.f32 %v892_v28, %v871_v47 }
 0x286   :  { %v1142_v33 = vpop.eup %1141  ;;  %v873_v49 = vmul.f32 %v857_v4, %v1518_v54  ;;  %v912_v48 = vmul.f32 %v897_v53, %v872_v8  ;;  %v860_v20 = vadd.f32 0.5, %v844_v46  ;;  %v845_v16 = vmul.f32 0.5, %v1140_v39 }
 0x287   :  { %v875_v60 = vmul.f32 %v859_v37, %v1521_v13  ;;  %v914_v17 = vmul.f32 %v897_v53, %v874_v35  ;;  %v862_v43 = vadd.f32 0.5, %v846_v30  ;;  %v847_v19 = vmul.f32 0.5, %v1142_v33 }
 0x288   :  { %v920_v29 = vadd.f32 %v908_v50, %v904_v63  ;;  %v913_v32 = vmul.f32 %v897_v53, %v873_v49  ;;  %v876_v22 = vmul.f32 %v860_v20, %v1524_v15  ;;  %v861_v54 = vadd.f32 0.5, %v845_v16 }
 0x289   :  { %v938_v44 = vadd.f32 %v910_v40, %v906_v7  ;;  %v915_v36 = vmul.f32 %v897_v53, %v875_v60  ;;  %v878_v9 = vmul.f32 %v862_v43, %v1527_v62  ;;  %v863_v13 = vadd.f32 0.5, %v847_v19 }
 0x28a   :  { %v929_v51 = vadd.f32 %v909_v45, %v905_v2  ;;  %v921_v52 = vadd.f32 %v920_v29, %v912_v48  ;;  %v916_v41 = vmul.f32 %v902_v34, %v876_v22  ;;  %v877_v42 = vmul.f32 %v861_v54, %v1530_v27 }
 0x28b   :  { %v947_v56 = vadd.f32 %v911_v57, %v907_v18  ;;  %v939_v58 = vadd.f32 %v938_v44, %v914_v17  ;;  %v918_v59 = vmul.f32 %v902_v34, %v878_v9  ;;  %v879_v31 = vmul.f32 %v863_v13, %v1533_v0 }
 0x28c   :  { %v930_v61 = vadd.f32 %v929_v51, %v913_v32  ;;  %v922_v5 = vadd.f32 %v921_v52, %v916_v41  ;;  %v917_v15 = vmul.f32 %v902_v34, %v877_v42  ;;  %v1168_v4 = vmov 1966171168  }
 0x28d   :  { %v948_v6 = vadd.f32 %v947_v56, %v915_v36  ;;  %v940_v10 = vadd.f32 %v939_v58, %v918_v59  ;;  %v919_v11 = vmul.f32 %v902_v34, %v879_v31  ;;  %v969_v39 = vunpack.c.l.s4 %v1168_v4 }
 0x28e   :  { %v923_v12 = vrot.slane %v922_v5, 4  ;;  %v931_v38 = vadd.f32 %v930_v61, %v917_v15  ;;  %v957_v18 = vstv %s1567_s6  ;;  %s1143_s6 = scalar_lea.vmem %s1003_s10, 64 }
 0x28f   :  { %v941_v62 = vrot.slane %v940_v10, 4  ;;  %v949_v14 = vadd.f32 %v948_v6, %v919_v11  ;;  %v970_v49 = vunpack.c.0.s8 %v969_v39  ;;  %p1144_p0 = scmp.ne.s32.totalorder %s1003_s10, %s1143_s6  ;;  %p1149_p2 = scmp.lt.s32.totalorder %s1143_s6, %s1143_s6 }
 0x290   :  { %v924_v25 = vadd.f32 %v923_v12, %v922_v5  ;;  %v932_v3 = vrot.slane %v931_v38, 4 }
 0x291   :  { %v942_v21 = vadd.f32 %v941_v62, %v940_v10  ;;  %v950_v55 = vrot.slane %v949_v14, 4  ;;  %v973_v48 = vsub.s32 %v970_v49, %v1273_v24  ;;  %p1150_p3 = por %p1149_p2, %p1148_p1 }
 0x292   :  { %v925_v27 = vrot.slane %v924_v25, 2  ;;  %v933_v26 = vadd.f32 %v932_v3, %v931_v38 }
 0x293   :  { %v943_v63 = vrot.slane %v942_v21, 2  ;;  %v951_v1 = vadd.f32 %v950_v55, %v949_v14  ;;  %p1151_p4 = pnand %p1150_p3, %p1144_p0 }
 0x294   :  { %v926_v8 = vadd.f32 %v925_v27, %v924_v25  ;;  %v934_v0 = vrot.slane %v933_v26, 2 }
 0x295   :  { %v944_v28 = vadd.f32 %v943_v63, %v942_v21  ;;  %v952_v7 = vrot.slane %v951_v1, 2 }
 0x296   :  { %v927_v47 = vrot.slane %v926_v8, 1  ;;  %v935_v35 = vadd.f32 %v934_v0, %v933_v26 }
 0x297   :  { %v945_v37 = vrot.slane %v944_v28, 1  ;;  %v953_v33 = vadd.f32 %v952_v7, %v951_v1 }
 0x298   :  { %v928_v2 = vadd.f32 %v927_v47, %v926_v8  ;;  %v936_v50 = vrot.slane %v935_v35, 1 }
 0x299   :  { %v946_v46 = vadd.f32 %v945_v37, %v944_v28  ;;  %v954_v53 = vrot.slane %v953_v33, 1 }
 0x29a   :  { %v937_v40 = vadd.f32 %v936_v50, %v935_v35  ;;  %v958_v30 = vadd.f32 %v957_v18, %v928_v2 }
 0x29b   :  { %v955_v60 = vadd.f32 %v954_v53, %v953_v33  ;;  %v960_v20 = vadd.f32 %v957_v18, %v946_v46 }
 0x29c   :  { %v959_v45 = vadd.f32 %v957_v18, %v937_v40 }
 0x29d   :  { %v961_v16 = vadd.f32 %v957_v18, %v955_v60 }
 0x29e   :  { %v966_v57 = vcombine.low %v958_v30, %v959_v45 }
 0x29f   :  { %v967_v17 = vcombine.low %v960_v20, %v961_v16 }
 0x2a0   :  { %v974_v43 = vrot.slane %v966_v57, %v973_v48 }
 0x2a1   :  { %v981_v19 = vrot.slane %v967_v17, %v973_v48 }
 0x2a3   :  { %v982_v29 = vcombine.low %v974_v43, %v981_v19 }
 0x2a5   :  { %v989_v32 = vrot.slane %v982_v29, %v973_v48 }
 0x2a7   :  { %995 = vst.msk [vmem:[#allocation3] sm:$0xf] %vm993_vm1, %v989_v32 }
 0x2a8   :  { %1154 = shalt.err (!%p1151_p4)
}
 0x2a9   :  { %1005 = dma.vmem_to_hbm [thread:$0]  %s1003_s10, 64, %s1568_s7, [#allocation4]  }
 0x2aa   :  { %1163 = dma.done.wait [#allocation4], 64  }
 0x2ab   :  { %1164 = vsyncadd [#allocation4], 4294967232 }
 0x2ac   :  { %1009 = vsyncpa [#allocation4], 1 }

// kernel: tpu_custom_call.1
= control target key start
LH: loop header
LB: loop body
LE: loop exit
PB: predicated region body
PF: predicated region fallthrough
CT: control target
= control target key end

     0   :  { %v1165_v2 = vmov 1   ;;  %v1166_v3 = vmov 0   ;;  %s1561_s0 = inlined_call_operand.vmem [shape: f32[2,512], index: 0, kind: input, shape index: {}]   ;;  %s1562_s1 = inlined_call_operand.vmem [shape: f32[32,2], index: 1, kind: input, shape index: {}]   ;;  %s1563_s2 = inlined_call_operand.vmem [shape: f32[32,1], index: 2, kind: input, shape index: {}]   ;;  %s1564_s3 = inlined_call_operand.vmem [shape: f32[2,32,32], index: 3, kind: input, shape index: {}]   ;;  %s1565_s4 = inlined_call_operand.vmem [shape: f32[2,32,1], index: 4, kind: input, shape index: {}]   ;;  %s1566_s5 = inlined_call_operand.vmem [shape: f32[32,1], index: 5, kind: input, shape index: {}]   ;;  %s1567_s6 = inlined_call_operand.<no memory space> [shape: f32[1,1], index: 6, kind: input, shape index: {}]   ;;  %s1568_s7 = inlined_call_operand.hbm [shape: f32[1,512], index: 7, kind: output, shape index: {}]  }
   0x1   :  { %v34_v0 = vld [vmem:[%s1562_s1 + $0x18] sm:$0xff]  ;;  %v33_v1 = vld [vmem:[%s1562_s1 + $0x10] sm:$0xff]  ;;  %1040 = vset.pattern.permute.xlu0 %v1165_v2  ;;  %1041 = vset.pattern.permute.xlu1 %v1166_v3  ;;  %v32_v4 = vld [vmem:[%s1562_s1 + $0x8] sm:$0xff] }
   0x2   :  { %105 = vperm.xlu0 %1040, %v34_v0   ;;  %47 = vperm.xlu1 %1041, %v33_v1  }
   0x6   :  { %1042 = vset.pattern.permute.xlu1 %v1165_v2  ;;  %97 = vperm.xlu0 %1040, %v32_v4  }
   0x7   :  { %101 = vperm.xlu1 %1042, %v33_v1  }
   0x8   :  { %13 = vsyncpa [#allocation4], 0  ;;  %v31_v5 = vld [vmem:[%s1562_s1] sm:$0xff]  ;;  %v164_v6 = vld [vmem:[%s1563_s2 + $0x18] sm:$0xff]  ;;  %v1167_v22 = vmov 0.0   ;;  %v56_v23 = vlaneseq  ;;  %vm309_vm0 = vcmask 261120  }
   0x9   :  { %v162_v7 = vld [vmem:[%s1563_s2 + $0x8] sm:$0xff]  ;;  %v288_v8 = vld [vmem:[%s1565_s4 + $0x18] sm:$0xff]  ;;  %v163_v9 = vld [vmem:[%s1563_s2 + $0x10] sm:$0xff]  ;;  %386 = vmatprep.mubr.f32.mxu0 %v1167_v22  ;;  %475 = vmatprep.mubr.f32.mxu1 %v1167_v22  ;;  %s1169_s9 = smov [#allocation3]  }
   0xa   :  { %1044 = vset.pattern.permute.xlu0 %v1166_v3  ;;  %v286_v10 = vld [vmem:[%s1565_s4 + $0x8] sm:$0xff]  ;;  %v161_v11 = vld [vmem:[%s1563_s2] sm:$0xff]  ;;  %v287_v13 = vld [vmem:[%s1565_s4 + $0x10] sm:$0xff]  ;;  %v1273_v24 = vshrl.u32 %v56_v23, 7  ;;  %s1002_s10 = sshll.u32 %s1169_s9, 4  ;;  %vm993_vm1 = vcmp.lt.s32.totalorder %v56_v23, 512  ;;  %s1003_s10 = int_to_ptr.vmem [resolvable:$true] %s1002_s10 }
   0xb   :  { %1043 = vset.pattern.permute.xlu1 %v1166_v3  ;;  %52 = vperm.xlu0 %1044, %v34_v0   ;;  %v1023_v12 = vld [vmem:[%s1565_s4 + $0x20] sm:$0xff]  ;;  %v1025_v14 = vld [vmem:[%s1565_s4 + $0x30] sm:$0xff]  ;;  %v1024_v17 = vld [vmem:[%s1565_s4 + $0x28] sm:$0xff]  ;;  %p1148_p1 = scmp.lt.s32.totalorder %s1003_s10, %s1003_s10 }
   0xc   :  { %42 = vperm.xlu1 %1043, %v32_v4   ;;  %v285_v15 = vld [vmem:[%s1565_s4] sm:$0xff]  ;;  %v882_v18 = vld [vmem:[%s1566_s5 + $0x10] sm:$0xff]  ;;  %v1026_v19 = vld [vmem:[%s1565_s4 + $0x38] sm:$0xff]  ;;  %v58_v27 = vsub.s32 0, %v1273_v24  ;;  %v62_v29 = vsub.s32 1, %v1273_v24  ;;  %v66_v30 = vsub.s32 2, %v1273_v24 }
   0xd   :  { %v880_v16 = vld [vmem:[%s1566_s5] sm:$0xff]  ;;  %v881_v20 = vld [vmem:[%s1566_s5 + $0x8] sm:$0xff]  ;;  %v883_v21 = vld [vmem:[%s1566_s5 + $0x18] sm:$0xff]  ;;  %v70_v31 = vsub.s32 3, %v1273_v24 }
   0xe   :  { %v1010_v28 = vld [vmem:[%s1561_s0 + $0x1] ss:$2 sm:$0xf]  ;;  %v28_v32 = vld [vmem:[%s1561_s0] ss:$2 sm:$0xf] }
   0xf   :  { %37 = vperm.xlu0 %1044, %v31_v5   ;;  %v1285_v35 = vrot.slane %v1010_v28, %v62_v29  ;;  %v59_v36 = vrot.slane %v28_v32, %v58_v27  ;;  %v1287_v37 = vrot.slane %v1010_v28, %v58_v27  ;;  %v1289_v38 = vrot.slane %v1010_v28, %v66_v30 }
  0x10   :  { %182 = vperm.xlu1 %1043, %v164_v6   ;;  %v1291_v39 = vrot.slane %v1010_v28, %v70_v31  ;;  %v63_v40 = vrot.slane %v28_v32, %v62_v29  ;;  %v67_v41 = vrot.slane %v28_v32, %v66_v30  ;;  %v1293_v42 = vrot.slane %v28_v32, %v70_v31 }
  0x13   :  { %172 = vperm.xlu0 %1044, %v162_v7  }
  0x14   :  { %1045 = vset.pattern.permute.xlu1 %v1165_v2 }
  0x15   :  { %93 = vperm.xlu1 %1045, %v31_v5  }
  0x17   :  { %306 = vperm.xlu0 %1044, %v288_v8  }
  0x19   :  { %1046 = vset.pattern.permute.xlu1 %v1166_v3 }
  0x1a   :  { %177 = vperm.xlu1 %1046, %v163_v9  }
  0x1b   :  { %296 = vperm.xlu0 %1044, %v286_v10  }
  0x1e   :  { %167 = vperm.xlu1 %1046, %v161_v11  }
  0x1f   :  { %592 = vperm.xlu0 %1044, %v1023_v12  }
  0x22   :  { %301 = vperm.xlu1 %1046, %v287_v13  }
  0x23   :  { %602 = vperm.xlu0 %1044, %v1025_v14  }
  0x26   :  { %291 = vperm.xlu1 %1046, %v285_v15  }
  0x27   :  { %886 = vperm.xlu0 %1044, %v880_v16  }
  0x2a   :  { %597 = vperm.xlu1 %1046, %v1024_v17  }
  0x2b   :  { %896 = vperm.xlu0 %1044, %v882_v18  }
  0x2e   :  { %607 = vperm.xlu1 %1046, %v1026_v19  }
  0x32   :  { %891 = vperm.xlu1 %1046, %v881_v20  }
  0x36   :  { %901 = vperm.xlu1 %1046, %v883_v21  }
  0x7d   :  { %v48_v25 = vpop.permute.xlu1 %47  ;;  %v106_v26 = vpop.permute.xlu0 %105 }
  0x7e   :  { %v142_v43 = vmul.f32 %v1285_v35, %v106_v26  ;;  %v141_v44 = vmul.f32 %v1287_v37, %v106_v26  ;;  %v143_v45 = vmul.f32 %v1289_v38, %v106_v26  ;;  %v144_v46 = vmul.f32 %v1291_v39, %v106_v26 }
  0x7f   :  { %v84_v62 = vmul.f32 %v59_v36, %v48_v25  ;;  %v85_v3 = vmul.f32 %v63_v40, %v48_v25  ;;  %v86_v4 = vmul.f32 %v67_v41, %v48_v25  ;;  %v87_v5 = vmul.f32 %v1293_v42, %v48_v25 }
  0x81   :  { %v98_v33 = vpop.permute.xlu0 %97 }
  0x82   :  { %v102_v34 = vpop.permute.xlu1 %101  ;;  %v133_v47 = vmul.f32 %v1287_v37, %v98_v33  ;;  %v134_v49 = vmul.f32 %v1285_v35, %v98_v33  ;;  %v135_v50 = vmul.f32 %v1289_v38, %v98_v33  ;;  %v136_v54 = vmul.f32 %v1291_v39, %v98_v33 }
  0x83   :  { %v137_v63 = vmul.f32 %v1287_v37, %v102_v34  ;;  %v138_v0 = vmul.f32 %v1285_v35, %v102_v34  ;;  %v139_v6 = vmul.f32 %v1289_v38, %v102_v34  ;;  %v140_v8 = vmul.f32 %v1291_v39, %v102_v34 }
  0x85   :  { %v153_v17 = vadd.f32 %v137_v63, %v84_v62  ;;  %v154_v18 = vadd.f32 %v138_v0, %v85_v3  ;;  %v155_v30 = vadd.f32 %v139_v6, %v86_v4 }
  0x86   :  { %v53_v48 = vpop.permute.xlu0 %52 }
  0x87   :  { %v89_v51 = vmul.f32 %v63_v40, %v53_v48  ;;  %v91_v52 = vmul.f32 %v1293_v42, %v53_v48  ;;  %v43_v53 = vpop.permute.xlu1 %42  ;;  %v88_v55 = vmul.f32 %v59_v36, %v53_v48  ;;  %v90_v56 = vmul.f32 %v67_v41, %v53_v48 }
  0x88   :  { %v80_v57 = vmul.f32 %v59_v36, %v43_v53  ;;  %v81_v58 = vmul.f32 %v63_v40, %v43_v53  ;;  %v82_v59 = vmul.f32 %v67_v41, %v43_v53  ;;  %v83_v60 = vmul.f32 %v1293_v42, %v43_v53 }
  0x89   :  { %v158_v61 = vadd.f32 %v142_v43, %v89_v51  ;;  %v160_v2 = vadd.f32 %v144_v46, %v91_v52  ;;  %v157_v10 = vadd.f32 %v141_v44, %v88_v55  ;;  %v159_v11 = vadd.f32 %v143_v45, %v90_v56 }
  0x8a   :  { %v38_v1 = vpop.permute.xlu0 %37  ;;  %v149_v12 = vadd.f32 %v133_v47, %v80_v57  ;;  %v150_v13 = vadd.f32 %v134_v49, %v81_v58  ;;  %v151_v14 = vadd.f32 %v135_v50, %v82_v59  ;;  %v152_v15 = vadd.f32 %v136_v54, %v83_v60 }
  0x8b   :  { %v183_v7 = vpop.permute.xlu1 %182  ;;  %v76_v28 = vmul.f32 %v59_v36, %v38_v1  ;;  %v77_v44 = vmul.f32 %v63_v40, %v38_v1  ;;  %v78_v45 = vmul.f32 %v67_v41, %v38_v1  ;;  %v79_v50 = vmul.f32 %v1293_v42, %v38_v1 }
  0x8c   :  { %v1310_v9 = vadd.f32 %v183_v7, %v158_v61  ;;  %v1313_v20 = vadd.f32 %v183_v7, %v160_v2  ;;  %v1323_v31 = vadd.f32 %v183_v7, %v157_v10  ;;  %v1328_v43 = vadd.f32 %v183_v7, %v159_v11 }
  0x8d   :  { %v156_v51 = vadd.f32 %v140_v8, %v87_v5 }
  0x8e   :  { %v173_v16 = vpop.permute.xlu0 %172  ;;  %v214_v19 = vmul.f32 0.5, %v1310_v9  ;;  %v216_v49 = vmul.f32 0.5, %v1313_v20  ;;  %v213_v52 = vmul.f32 0.5, %v1323_v31 }
  0x8f   :  { %v1315_v21 = vadd.f32 %v173_v16, %v149_v12  ;;  %v1317_v25 = vadd.f32 %v173_v16, %v150_v13  ;;  %v1319_v26 = vadd.f32 %v173_v16, %v151_v14  ;;  %v1321_v27 = vadd.f32 %v173_v16, %v152_v15 }
  0x90   :  { %v94_v29 = vpop.permute.xlu1 %93  ;;  %1047 = vtanh.f32 %v214_v19 }
  0x91   :  { %v205_v32 = vmul.f32 0.5, %v1315_v21  ;;  %v206_v33 = vmul.f32 0.5, %v1317_v25  ;;  %v207_v34 = vmul.f32 0.5, %v1319_v26  ;;  %v208_v46 = vmul.f32 0.5, %v1321_v27 }
  0x92   :  { %v129_v47 = vmul.f32 %v1287_v37, %v94_v29  ;;  %v130_v36 = vmul.f32 %v1285_v35, %v94_v29  ;;  %v131_v48 = vmul.f32 %v1289_v38, %v94_v29  ;;  %v132_v40 = vmul.f32 %v1291_v39, %v94_v29 }
  0x93   :  { %1049 = vtanh.f32 %v205_v32  ;;  %v215_v37 = vmul.f32 0.5, %v1328_v43 }
  0x94   :  { %1051 = vtanh.f32 %v206_v33  ;;  %v145_v53 = vadd.f32 %v129_v47, %v76_v28  ;;  %v146_v42 = vadd.f32 %v130_v36, %v77_v44  ;;  %v147_v56 = vadd.f32 %v131_v48, %v78_v45 }
  0x95   :  { %1053 = vtanh.f32 %v207_v34  ;;  %v178_v41 = vpop.permute.xlu1 %177  ;;  %v148_v61 = vadd.f32 %v132_v40, %v79_v50 }
  0x96   :  { %1055 = vtanh.f32 %v208_v46  ;;  %v1339_v54 = vadd.f32 %v178_v41, %v153_v17  ;;  %v1341_v35 = vadd.f32 %v178_v41, %v154_v18  ;;  %v1343_v38 = vadd.f32 %v178_v41, %v155_v30 }
  0x97   :  { %v1345_v55 = vadd.f32 %v178_v41, %v156_v51  ;;  %1057 = vtanh.f32 %v216_v49 }
  0x98   :  { %v209_v57 = vmul.f32 0.5, %v1339_v54  ;;  %v210_v39 = vmul.f32 0.5, %v1341_v35  ;;  %v211_v58 = vmul.f32 0.5, %v1343_v38  ;;  %1059 = vtanh.f32 %v213_v52 }
  0x99   :  { %v212_v59 = vmul.f32 0.5, %v1345_v55  ;;  %v168_v60 = vpop.permute.xlu1 %167  ;;  %1061 = vtanh.f32 %v215_v37 }
  0x9a   :  { %1063 = vtanh.f32 %v209_v57  ;;  %v1351_v62 = vadd.f32 %v168_v60, %v145_v53  ;;  %v1353_v63 = vadd.f32 %v168_v60, %v146_v42  ;;  %v1355_v0 = vadd.f32 %v168_v60, %v147_v56 }
  0x9b   :  { %1065 = vtanh.f32 %v210_v39  ;;  %v1357_v1 = vadd.f32 %v168_v60, %v148_v61 }
  0x9c   :  { %1067 = vtanh.f32 %v211_v58  ;;  %v201_v2 = vmul.f32 0.5, %v1351_v62  ;;  %v202_v3 = vmul.f32 0.5, %v1353_v63  ;;  %v203_v4 = vmul.f32 0.5, %v1355_v0 }
  0x9d   :  { %v1048_v5 = vpop.eup %1047  ;;  %1069 = vtanh.f32 %v212_v59  ;;  %v204_v6 = vmul.f32 0.5, %v1357_v1 }
  0x9e   :  { %1071 = vtanh.f32 %v201_v2  ;;  %v246_v7 = vmul.f32 0.5, %v1048_v5 }
  0x9f   :  { %1073 = vtanh.f32 %v202_v3 }
  0xa0   :  { %v1050_v8 = vpop.eup %1049  ;;  %1075 = vtanh.f32 %v203_v4  ;;  %v262_v10 = vadd.f32 0.5, %v246_v7 }
  0xa1   :  { %v1052_v11 = vpop.eup %1051  ;;  %1077 = vtanh.f32 %v204_v6  ;;  %v237_v45 = vmul.f32 0.5, %v1050_v8 }
  0xa2   :  { %v1054_v12 = vpop.eup %1053  ;;  %v278_v13 = vmul.f32 %v262_v10, %v1310_v9  ;;  %v238_v32 = vmul.f32 0.5, %v1052_v11 }
  0xa3   :  { %v1056_v14 = vpop.eup %1055  ;;  %v239_v40 = vmul.f32 0.5, %v1054_v12  ;;  %v253_v58 = vadd.f32 0.5, %v237_v45 }
  0xa4   :  { %v1058_v15 = vpop.eup %1057  ;;  %346 = vmatprep.subr.mxu0 %v278_v13  ;;  %v240_v48 = vmul.f32 0.5, %v1056_v14  ;;  %v254_v56 = vadd.f32 0.5, %v238_v32 }
  0xa5   :  { %v1060_v16 = vpop.eup %1059  ;;  %v248_v17 = vmul.f32 0.5, %v1058_v15  ;;  %v255_v5 = vadd.f32 0.5, %v239_v40  ;;  %v269_v12 = vmul.f32 %v253_v58, %v1315_v21  ;;  %v281_v21 = vld [vmem:[%s1564_s3] sm:$0xff] }
  0xa6   :  { %v1062_v18 = vpop.eup %1061  ;;  %v245_v19 = vmul.f32 0.5, %v1060_v16  ;;  %v256_v2 = vadd.f32 0.5, %v240_v48 }
  0xa7   :  { %v1064_v28 = vpop.eup %1063  ;;  %v264_v29 = vadd.f32 0.5, %v248_v17  ;;  %v247_v30 = vmul.f32 0.5, %v1062_v18 }
  0xa8   :  { %v1066_v33 = vpop.eup %1065  ;;  %v261_v34 = vadd.f32 0.5, %v245_v19  ;;  %v241_v44 = vmul.f32 0.5, %v1064_v28 }
  0xa9   :  { %v1068_v46 = vpop.eup %1067  ;;  %v280_v47 = vmul.f32 %v264_v29, %v1313_v20  ;;  %v263_v36 = vadd.f32 0.5, %v247_v30  ;;  %v242_v9 = vmul.f32 0.5, %v1066_v33 }
  0xaa   :  { %v1070_v49 = vpop.eup %1069  ;;  %v277_v50 = vmul.f32 %v261_v34, %v1323_v31  ;;  %v257_v51 = vadd.f32 0.5, %v241_v44  ;;  %v243_v52 = vmul.f32 0.5, %v1068_v46 }
  0xab   :  { %v1072_v41 = vpop.eup %1071  ;;  %435 = vmatprep.subr.mxu1 %v280_v47  ;;  %v279_v53 = vmul.f32 %v263_v36, %v1328_v43  ;;  %v258_v37 = vadd.f32 0.5, %v242_v9  ;;  %v244_v42 = vmul.f32 0.5, %v1070_v49 }
  0xac   :  { %v1074_v57 = vpop.eup %1073  ;;  %347 = vmatpush1.msra.mxu0 %v277_v50  ;;  %v273_v20 = vmul.f32 %v257_v51, %v1339_v54  ;;  %v259_v39 = vadd.f32 0.5, %v243_v52  ;;  %v233_v59 = vmul.f32 0.5, %v1072_v41  ;;  %v270_v54 = vmul.f32 %v254_v56, %v1317_v25 }
  0xad   :  { %v1076_v60 = vpop.eup %1075  ;;  %436 = vmatpush1.msra.mxu1 %v279_v53  ;;  %v274_v31 = vmul.f32 %v258_v37, %v1341_v35  ;;  %v260_v61 = vadd.f32 0.5, %v244_v42  ;;  %v234_v3 = vmul.f32 0.5, %v1074_v57 }
  0xae   :  { %v1078_v4 = vpop.eup %1077  ;;  %v275_v43 = vmul.f32 %v259_v39, %v1343_v38  ;;  %v249_v6 = vadd.f32 0.5, %v233_v59  ;;  %v235_v7 = vmul.f32 0.5, %v1076_v60  ;;  %v272_v38 = vmul.f32 %v256_v2, %v1321_v27  ;;  %v283_v27 = vld [vmem:[%s1564_s3 + $0x10] sm:$0xff] }
  0xaf   :  { %348 = vmatprep.subr.mxu0 %v274_v31  ;;  %v276_v8 = vmul.f32 %v260_v61, %v1345_v55  ;;  %v250_v10 = vadd.f32 0.5, %v234_v3  ;;  %v236_v11 = vmul.f32 0.5, %v1078_v4  ;;  %v271_v55 = vmul.f32 %v255_v5, %v1319_v26  ;;  %v282_v26 = vld [vmem:[%s1564_s3 + $0x8] sm:$0xff] }
  0xb0   :  { %349 = vmatpush1.msra.mxu0 %v273_v20  ;;  %v265_v35 = vmul.f32 %v249_v6, %v1351_v62  ;;  %v251_v13 = vadd.f32 0.5, %v235_v7 }
  0xb1   :  { %437 = vmatprep.subr.mxu1 %v276_v8  ;;  %350 = vmatprep.subr.mxu0 %v270_v54  ;;  %v266_v14 = vmul.f32 %v250_v10, %v1353_v63  ;;  %v252_v15 = vadd.f32 0.5, %v236_v11  ;;  %v284_v63 = vld [vmem:[%s1564_s3 + $0x18] sm:$0xff] }
  0xb2   :  { %438 = vmatpush1.msra.mxu1 %v275_v43  ;;  %351 = vmatpush1.msra.mxu0 %v269_v12  ;;  %v267_v25 = vmul.f32 %v251_v13, %v1355_v0  ;;  %v302_v0 = vpop.permute.xlu1 %301 }
  0xb3   :  { %439 = vmatprep.subr.mxu1 %v272_v38  ;;  %352 = vmatprep.subr.mxu0 %v266_v14  ;;  %v268_v62 = vmul.f32 %v252_v15, %v1357_v1  ;;  %v307_v1 = vpop.permute.xlu0 %306 }
  0xb4   :  { %440 = vmatpush1.msra.mxu1 %v271_v55  ;;  %353 = vmatpush1.msra.mxu0 %v265_v35 }
  0xb5   :  { %441 = vmatprep.subr.mxu1 %v268_v62  ;;  %1011 = vmatmul.mubr.msk.f32.vlgmr.msra.gmra.mxu0 %vm309_vm0, %v281_v21 }
  0xb6   :  { %442 = vmatpush1.msra.mxu1 %v267_v25  ;;  %392 = vmatprep.mubr.f32.mxu0 %v1167_v22  ;;  %v292_v16 = vpop.permute.xlu1 %291 }
  0xb7   :  { %1015 = vmatmul.mubr.msk.f32.vlgmr.msra.gmra.mxu1 %vm309_vm0, %v281_v21  ;;  %v297_v34 = vpop.permute.xlu0 %296 }
  0xb8   :  { %481 = vmatprep.mubr.f32.mxu1 %v1167_v22 }
  0xb9   :  { %1012 = vmatmul.mubr.msk.f32.gmra.mxu0 %vm309_vm0, %v282_v26 }
  0xba   :  { %398 = vmatprep.mubr.f32.mxu0 %v1167_v22 }
  0xbb   :  { %1016 = vmatmul.mubr.msk.f32.gmra.mxu1 %vm309_vm0, %v282_v26 }
  0xbc   :  { %487 = vmatprep.mubr.f32.mxu1 %v1167_v22 }
  0xbd   :  { %1013 = vmatmul.mubr.msk.f32.gmra.mxu0 %vm309_vm0, %v283_v27 }
  0xbe   :  { %404 = vmatprep.mubr.f32.mxu0 %v1167_v22 }
  0xbf   :  { %1017 = vmatmul.mubr.msk.f32.gmra.mxu1 %vm309_vm0, %v283_v27 }
  0xc0   :  { %493 = vmatprep.mubr.f32.mxu1 %v1167_v22 }
  0xc1   :  { %1014 = vmatmul.mubr.msk.f32.gmra.mxu0 %vm309_vm0, %v284_v63 }
  0xc2   :  { %686 = vmatprep.mubr.f32.mxu0 %v1167_v22 }
  0xc3   :  { %1018 = vmatmul.mubr.msk.f32.gmra.mxu1 %vm309_vm0, %v284_v63 }
  0xc4   :  { %775 = vmatprep.mubr.f32.mxu1 %v1167_v22 }
 0x175   :  { %v388_v17 = vpop.f32.mrf.mxu0 }
 0x176   :  { %v1407_v18 = vadd.f32 %v388_v17, %v292_v16 }
 0x177   :  { %v477_v19 = vpop.f32.mrf.mxu1  ;;  %v390_v28 = vpop.f32.mrf.mxu0 }
 0x178   :  { %v500_v29 = vmul.f32 0.5, %v1407_v18  ;;  %v1410_v30 = vadd.f32 %v390_v28, %v292_v16  ;;  %v1439_v3 = vadd.f32 %v477_v19, %v292_v16 }
 0x179   :  { %v479_v32 = vpop.f32.mrf.mxu1  ;;  %v394_v33 = vpop.f32.mrf.mxu0 }
 0x17a   :  { %v501_v44 = vmul.f32 0.5, %v1410_v30  ;;  %v1413_v45 = vadd.f32 %v479_v32, %v292_v16  ;;  %v1415_v46 = vadd.f32 %v394_v33, %v297_v34  ;;  %1079 = vtanh.f32 %v500_v29 }
 0x17b   :  { %v483_v47 = vpop.f32.mrf.mxu1  ;;  %v396_v36 = vpop.f32.mrf.mxu0  ;;  %v502_v13 = vmul.f32 0.5, %v1439_v3 }
 0x17c   :  { %v503_v9 = vmul.f32 0.5, %v1413_v45  ;;  %v1418_v48 = vadd.f32 %v483_v47, %v297_v34  ;;  %v1420_v49 = vadd.f32 %v396_v36, %v297_v34  ;;  %1081 = vtanh.f32 %v501_v44 }
 0x17d   :  { %v504_v50 = vmul.f32 0.5, %v1415_v46  ;;  %v485_v51 = vpop.f32.mrf.mxu1  ;;  %v400_v52 = vpop.f32.mrf.mxu0 }
 0x17e   :  { %1083 = vtanh.f32 %v503_v9  ;;  %v506_v40 = vmul.f32 0.5, %v1418_v48  ;;  %v505_v41 = vmul.f32 0.5, %v1420_v49  ;;  %v1425_v53 = vadd.f32 %v485_v51, %v297_v34 }
 0x17f   :  { %1085 = vtanh.f32 %v504_v50  ;;  %v1427_v37 = vadd.f32 %v400_v52, %v302_v0  ;;  %v489_v42 = vpop.f32.mrf.mxu1  ;;  %v402_v56 = vpop.f32.mrf.mxu0 }
 0x180   :  { %1087 = vtanh.f32 %v506_v40  ;;  %v507_v57 = vmul.f32 0.5, %v1425_v53  ;;  %v1430_v20 = vadd.f32 %v489_v42, %v302_v0  ;;  %v1432_v39 = vadd.f32 %v402_v56, %v302_v0 }
 0x181   :  { %1089 = vtanh.f32 %v505_v41  ;;  %v508_v58 = vmul.f32 0.5, %v1427_v37  ;;  %v491_v59 = vpop.f32.mrf.mxu1  ;;  %v406_v60 = vpop.f32.mrf.mxu0 }
 0x182   :  { %1091 = vtanh.f32 %v507_v57  ;;  %v510_v31 = vmul.f32 0.5, %v1430_v20  ;;  %v509_v61 = vmul.f32 0.5, %v1432_v39  ;;  %v1437_v2 = vadd.f32 %v491_v59, %v302_v0 }
 0x183   :  { %1093 = vtanh.f32 %v508_v58  ;;  %v1441_v4 = vadd.f32 %v406_v60, %v307_v1  ;;  %v495_v43 = vpop.f32.mrf.mxu1  ;;  %v408_v5 = vpop.f32.mrf.mxu0 }
 0x184   :  { %1095 = vtanh.f32 %v510_v31  ;;  %v511_v6 = vmul.f32 0.5, %v1437_v2  ;;  %v1444_v7 = vadd.f32 %v495_v43, %v307_v1  ;;  %v409_v8 = vadd.f32 %v408_v5, %v307_v1 }
 0x185   :  { %1097 = vtanh.f32 %v509_v61  ;;  %v512_v54 = vmul.f32 0.5, %v1441_v4  ;;  %v497_v10 = vpop.f32.mrf.mxu1 }
 0x186   :  { %1099 = vtanh.f32 %v511_v6  ;;  %v514_v11 = vmul.f32 0.5, %v1444_v7  ;;  %v513_v12 = vmul.f32 0.5, %v409_v8  ;;  %v498_v35 = vadd.f32 %v497_v10, %v307_v1 }
 0x187   :  { %1101 = vtanh.f32 %v512_v54  ;;  %v1080_v14 = vpop.eup %1079 }
 0x188   :  { %1103 = vtanh.f32 %v514_v11  ;;  %v515_v38 = vmul.f32 0.5, %v498_v35  ;;  %v532_v32 = vmul.f32 0.5, %v1080_v14 }
 0x189   :  { %1105 = vtanh.f32 %v513_v12  ;;  %v1082_v15 = vpop.eup %1081 }
 0x18a   :  { %1107 = vtanh.f32 %v515_v38  ;;  %v533_v36 = vmul.f32 0.5, %v1082_v15 }
 0x18b   :  { %v1084_v55 = vpop.eup %1083  ;;  %1109 = vtanh.f32 %v502_v13 }
 0x18c   :  { %v1086_v25 = vpop.eup %1085  ;;  %v535_v31 = vmul.f32 0.5, %v1084_v55  ;;  %v549_v15 = vadd.f32 0.5, %v533_v36  ;;  %v548_v55 = vadd.f32 0.5, %v532_v32  ;;  %v598_v32 = vpop.permute.xlu1 %597 }
 0x18d   :  { %v1088_v21 = vpop.eup %1087  ;;  %v536_v40 = vmul.f32 0.5, %v1086_v25 }
 0x18e   :  { %v1090_v62 = vpop.eup %1089  ;;  %v538_v57 = vmul.f32 0.5, %v1088_v21 }
 0x18f   :  { %v1092_v26 = vpop.eup %1091  ;;  %v537_v9 = vmul.f32 0.5, %v1090_v62  ;;  %v552_v12 = vadd.f32 0.5, %v536_v40 }
 0x190   :  { %v1094_v27 = vpop.eup %1093  ;;  %v539_v41 = vmul.f32 0.5, %v1092_v26  ;;  %v554_v25 = vadd.f32 0.5, %v538_v57  ;;  %v551_v26 = vadd.f32 0.5, %v535_v31 }
 0x191   :  { %v1096_v63 = vpop.eup %1095  ;;  %v540_v33 = vmul.f32 0.5, %v1094_v27  ;;  %v553_v54 = vadd.f32 0.5, %v537_v9 }
 0x192   :  { %v1098_v0 = vpop.eup %1097  ;;  %v542_v50 = vmul.f32 0.5, %v1096_v63  ;;  %v555_v13 = vadd.f32 0.5, %v539_v41 }
 0x193   :  { %v1100_v16 = vpop.eup %1099  ;;  %v541_v19 = vmul.f32 0.5, %v1098_v0  ;;  %v556_v61 = vadd.f32 0.5, %v540_v33  ;;  %v569_v0 = vmul.f32 %v553_v54, %v1420_v49  ;;  %v567_v49 = vmul.f32 %v551_v26, %v1413_v45  ;;  %v1022_v45 = vld [vmem:[%s1564_s3 + $0x38] sm:$0xff] }
 0x194   :  { %v1102_v1 = vpop.eup %1101  ;;  %v543_v34 = vmul.f32 0.5, %v1100_v16  ;;  %v558_v10 = vadd.f32 0.5, %v542_v50 }
 0x195   :  { %v1104_v17 = vpop.eup %1103  ;;  %v544_v28 = vmul.f32 0.5, %v1102_v1  ;;  %v557_v58 = vadd.f32 0.5, %v541_v19  ;;  %v572_v27 = vmul.f32 %v556_v61, %v1427_v37  ;;  %v570_v37 = vmul.f32 %v554_v25, %v1418_v48  ;;  %v593_v48 = vpop.permute.xlu0 %592 }
 0x196   :  { %v1106_v29 = vpop.eup %1105  ;;  %v546_v44 = vmul.f32 0.5, %v1104_v17  ;;  %v559_v43 = vadd.f32 0.5, %v543_v34 }
 0x197   :  { %v1108_v47 = vpop.eup %1107  ;;  %v545_v51 = vmul.f32 0.5, %v1106_v29  ;;  %v560_v42 = vadd.f32 0.5, %v544_v28  ;;  %v573_v21 = vmul.f32 %v557_v58, %v1432_v39  ;;  %v568_v39 = vmul.f32 %v552_v12, %v1415_v46  ;;  %v1019_v46 = vld [vmem:[%s1564_s3 + $0x20] sm:$0xff] }
 0x198   :  { %v1110_v52 = vpop.eup %1109  ;;  %v547_v56 = vmul.f32 0.5, %v1108_v47  ;;  %v562_v59 = vadd.f32 0.5, %v546_v44  ;;  %v575_v63 = vmul.f32 %v559_v43, %v1437_v2  ;;  %v564_v2 = vmul.f32 %v548_v55, %v1407_v18  ;;  %v1020_v18 = vld [vmem:[%s1564_s3 + $0x28] sm:$0xff] }
 0x199   :  { %v561_v60 = vadd.f32 0.5, %v545_v51  ;;  %v534_v6 = vmul.f32 0.5, %v1110_v52  ;;  %v576_v38 = vmul.f32 %v560_v42, %v1441_v4  ;;  %v574_v4 = vmul.f32 %v558_v10, %v1430_v20  ;;  %v603_v42 = vpop.permute.xlu0 %602 }
 0x19a   :  { %v563_v5 = vadd.f32 0.5, %v547_v56  ;;  %v578_v62 = vmul.f32 %v562_v59, %v1444_v7  ;;  %v571_v7 = vmul.f32 %v555_v13, %v1425_v53 }
 0x19b   :  { %v577_v11 = vmul.f32 %v561_v60, %v409_v8  ;;  %v550_v8 = vadd.f32 0.5, %v534_v6 }
 0x19c   :  { %v579_v14 = vmul.f32 %v563_v5, %v498_v35  ;;  %v565_v35 = vmul.f32 %v549_v15, %v1410_v30  ;;  %v1021_v30 = vld [vmem:[%s1564_s3 + $0x30] sm:$0xff] }
 0x19d   :  { %646 = vmatprep.subr.mxu0 %v577_v11  ;;  %v566_v53 = vmul.f32 %v550_v8, %v1439_v3  ;;  %v608_v11 = vpop.permute.xlu1 %607 }
 0x19e   :  { %735 = vmatprep.subr.mxu1 %v579_v14  ;;  %647 = vmatpush1.msra.mxu0 %v576_v38 }
 0x19f   :  { %736 = vmatpush1.msra.mxu1 %v578_v62  ;;  %648 = vmatprep.subr.mxu0 %v573_v21 }
 0x1a0   :  { %737 = vmatprep.subr.mxu1 %v575_v63  ;;  %649 = vmatpush1.msra.mxu0 %v572_v27 }
 0x1a1   :  { %738 = vmatpush1.msra.mxu1 %v574_v4  ;;  %650 = vmatprep.subr.mxu0 %v569_v0 }
 0x1a2   :  { %739 = vmatprep.subr.mxu1 %v571_v7  ;;  %651 = vmatpush1.msra.mxu0 %v568_v39 }
 0x1a3   :  { %740 = vmatpush1.msra.mxu1 %v570_v37  ;;  %652 = vmatprep.subr.mxu0 %v565_v35 }
 0x1a4   :  { %741 = vmatprep.subr.mxu1 %v567_v49  ;;  %653 = vmatpush1.msra.mxu0 %v564_v2 }
 0x1a5   :  { %742 = vmatpush1.msra.mxu1 %v566_v53  ;;  %1027 = vmatmul.mubr.msk.f32.vlgmr.msra.gmra.mxu0 %vm309_vm0, %v1019_v46 }
 0x1a6   :  { %1031 = vmatmul.mubr.msk.f32.vlgmr.msra.gmra.mxu1 %vm309_vm0, %v1019_v46  ;;  %692 = vmatprep.mubr.f32.mxu0 %v1167_v22 }
 0x1a7   :  { %781 = vmatprep.mubr.f32.mxu1 %v1167_v22 }
 0x1a9   :  { %1028 = vmatmul.mubr.msk.f32.gmra.mxu0 %vm309_vm0, %v1020_v18 }
 0x1aa   :  { %1032 = vmatmul.mubr.msk.f32.gmra.mxu1 %vm309_vm0, %v1020_v18  ;;  %698 = vmatprep.mubr.f32.mxu0 %v1167_v22 }
 0x1ab   :  { %787 = vmatprep.mubr.f32.mxu1 %v1167_v22 }
 0x1ad   :  { %1029 = vmatmul.mubr.msk.f32.gmra.mxu0 %vm309_vm0, %v1021_v30 }
 0x1ae   :  { %1033 = vmatmul.mubr.msk.f32.gmra.mxu1 %vm309_vm0, %v1021_v30  ;;  %704 = vmatprep.mubr.f32.mxu0 %v1167_v22 }
 0x1af   :  { %793 = vmatprep.mubr.f32.mxu1 %v1167_v22 }
 0x1b1   :  { %1030 = vmatmul.mubr.msk.f32.gmra.mxu0 %vm309_vm0, %v1022_v45 }
 0x1b2   :  { %1034 = vmatmul.mubr.msk.f32.gmra.mxu1 %vm309_vm0, %v1022_v45 }
 0x265   :  { %v688_v20 = vpop.f32.mrf.mxu0 }
 0x266   :  { %v1489_v3 = vadd.f32 %v688_v20, %v593_v48  ;;  %v777_v16 = vpop.f32.mrf.mxu1 }
 0x267   :  { %v1491_v1 = vadd.f32 %v777_v16, %v593_v48  ;;  %v690_v17 = vpop.f32.mrf.mxu0 }
 0x268   :  { %v800_v19 = vmul.f32 0.5, %v1489_v3  ;;  %v1494_v28 = vadd.f32 %v690_v17, %v593_v48  ;;  %v779_v29 = vpop.f32.mrf.mxu1 }
 0x269   :  { %v802_v22 = vmul.f32 0.5, %v1491_v1  ;;  %v1497_v33 = vadd.f32 %v779_v29, %v593_v48  ;;  %v694_v34 = vpop.f32.mrf.mxu0 }
 0x26a   :  { %1111 = vtanh.f32 %v800_v19  ;;  %v801_v44 = vmul.f32 0.5, %v1494_v28  ;;  %v1500_v47 = vadd.f32 %v694_v34, %v598_v32  ;;  %v783_v36 = vpop.f32.mrf.mxu1 }
 0x26b   :  { %1113 = vtanh.f32 %v802_v22  ;;  %v803_v9 = vmul.f32 0.5, %v1497_v33  ;;  %v1503_v50 = vadd.f32 %v783_v36, %v598_v32  ;;  %v696_v51 = vpop.f32.mrf.mxu0 }
 0x26c   :  { %1115 = vtanh.f32 %v801_v44  ;;  %v804_v52 = vmul.f32 0.5, %v1500_v47  ;;  %v1506_v40 = vadd.f32 %v696_v51, %v598_v32  ;;  %v785_v41 = vpop.f32.mrf.mxu1 }
 0x26d   :  { %1117 = vtanh.f32 %v803_v9  ;;  %v806_v56 = vmul.f32 0.5, %v1503_v50  ;;  %v1509_v57 = vadd.f32 %v785_v41, %v598_v32  ;;  %v700_v58 = vpop.f32.mrf.mxu0 }
 0x26e   :  { %1119 = vtanh.f32 %v804_v52  ;;  %v805_v59 = vmul.f32 0.5, %v1506_v40  ;;  %v1512_v60 = vadd.f32 %v700_v58, %v603_v42  ;;  %v789_v31 = vpop.f32.mrf.mxu1 }
 0x26f   :  { %1121 = vtanh.f32 %v806_v56  ;;  %v807_v61 = vmul.f32 0.5, %v1509_v57  ;;  %v1515_v43 = vadd.f32 %v789_v31, %v603_v42  ;;  %v702_v5 = vpop.f32.mrf.mxu0 }
 0x270   :  { %1123 = vtanh.f32 %v805_v59  ;;  %v808_v6 = vmul.f32 0.5, %v1512_v60  ;;  %v1518_v54 = vadd.f32 %v702_v5, %v603_v42  ;;  %v791_v10 = vpop.f32.mrf.mxu1  ;;  %v887_v59 = vpop.permute.xlu0 %886 }
 0x271   :  { %1125 = vtanh.f32 %v807_v61  ;;  %v810_v12 = vmul.f32 0.5, %v1515_v43  ;;  %v1521_v13 = vadd.f32 %v791_v10, %v603_v42  ;;  %v706_v38 = vpop.f32.mrf.mxu0 }
 0x272   :  { %1127 = vtanh.f32 %v808_v6  ;;  %v809_v14 = vmul.f32 0.5, %v1518_v54  ;;  %v1524_v15 = vadd.f32 %v706_v38, %v608_v11  ;;  %v795_v25 = vpop.f32.mrf.mxu1 }
 0x273   :  { %1129 = vtanh.f32 %v810_v12  ;;  %v811_v21 = vmul.f32 0.5, %v1521_v13  ;;  %v1527_v62 = vadd.f32 %v795_v25, %v608_v11  ;;  %v708_v55 = vpop.f32.mrf.mxu0 }
 0x274   :  { %1131 = vtanh.f32 %v809_v14  ;;  %v812_v26 = vmul.f32 0.5, %v1524_v15  ;;  %v1530_v27 = vadd.f32 %v708_v55, %v608_v11  ;;  %v797_v63 = vpop.f32.mrf.mxu1 }
 0x275   :  { %1133 = vtanh.f32 %v811_v21  ;;  %v814_v8 = vmul.f32 0.5, %v1527_v62  ;;  %v1533_v0 = vadd.f32 %v797_v63, %v608_v11 }
 0x276   :  { %1135 = vtanh.f32 %v812_v26  ;;  %v813_v4 = vmul.f32 0.5, %v1530_v27 }
 0x277   :  { %v1112_v39 = vpop.eup %1111  ;;  %1137 = vtanh.f32 %v814_v8  ;;  %v815_v7 = vmul.f32 0.5, %v1533_v0 }
 0x278   :  { %v1114_v35 = vpop.eup %1113  ;;  %v832_v37 = vmul.f32 0.5, %v1112_v39  ;;  %1139 = vtanh.f32 %v813_v4 }
 0x279   :  { %v1116_v2 = vpop.eup %1115  ;;  %v834_v49 = vmul.f32 0.5, %v1114_v35  ;;  %1141 = vtanh.f32 %v815_v7 }
 0x27a   :  { %v1118_v46 = vpop.eup %1117  ;;  %v833_v53 = vmul.f32 0.5, %v1116_v2  ;;  %v848_v48 = vadd.f32 0.5, %v832_v37 }
 0x27b   :  { %v1120_v18 = vpop.eup %1119  ;;  %v835_v30 = vmul.f32 0.5, %v1118_v46  ;;  %v850_v17 = vadd.f32 0.5, %v834_v49 }
 0x27c   :  { %v1122_v45 = vpop.eup %1121  ;;  %v836_v20 = vmul.f32 0.5, %v1120_v18  ;;  %v849_v32 = vadd.f32 0.5, %v833_v53  ;;  %v864_v41 = vmul.f32 %v848_v48, %v1489_v3  ;;  %v897_v53 = vpop.permute.xlu0 %896 }
 0x27d   :  { %v1124_v16 = vpop.eup %1123  ;;  %v838_v19 = vmul.f32 0.5, %v1122_v45  ;;  %v851_v36 = vadd.f32 0.5, %v835_v30  ;;  %v866_v31 = vmul.f32 %v850_v17, %v1491_v1 }
 0x27e   :  { %v1126_v29 = vpop.eup %1125  ;;  %v852_v22 = vadd.f32 0.5, %v836_v20  ;;  %v837_v34 = vmul.f32 0.5, %v1124_v16  ;;  %v865_v10 = vmul.f32 %v849_v32, %v1494_v28  ;;  %v904_v63 = vmul.f32 %v887_v59, %v864_v41  ;;  %v892_v28 = vpop.permute.xlu1 %891 }
 0x27f   :  { %v1128_v44 = vpop.eup %1127  ;;  %v854_v9 = vadd.f32 0.5, %v838_v19  ;;  %v839_v51 = vmul.f32 0.5, %v1126_v29  ;;  %v867_v25 = vmul.f32 %v851_v36, %v1497_v33  ;;  %v906_v7 = vmul.f32 %v887_v59, %v866_v31 }
 0x280   :  { %v1130_v52 = vpop.eup %1129  ;;  %v853_v42 = vadd.f32 0.5, %v837_v34  ;;  %v840_v56 = vmul.f32 0.5, %v1128_v44  ;;  %v868_v11 = vmul.f32 %v852_v22, %v1500_v47  ;;  %v905_v2 = vmul.f32 %v887_v59, %v865_v10 }
 0x281   :  { %v1132_v58 = vpop.eup %1131  ;;  %v855_v61 = vadd.f32 0.5, %v839_v51  ;;  %v842_v5 = vmul.f32 0.5, %v1130_v52  ;;  %v870_v3 = vmul.f32 %v854_v9, %v1503_v50  ;;  %v907_v18 = vmul.f32 %v887_v59, %v867_v25 }
 0x282   :  { %v1134_v6 = vpop.eup %1133  ;;  %v856_v12 = vadd.f32 0.5, %v840_v56  ;;  %v841_v38 = vmul.f32 0.5, %v1132_v58  ;;  %v869_v1 = vmul.f32 %v853_v42, %v1506_v40  ;;  %v908_v50 = vmul.f32 %v892_v28, %v868_v11  ;;  %v902_v34 = vpop.permute.xlu1 %901 }
 0x283   :  { %v1136_v14 = vpop.eup %1135  ;;  %v858_v21 = vadd.f32 0.5, %v842_v5  ;;  %v843_v55 = vmul.f32 0.5, %v1134_v6  ;;  %v871_v47 = vmul.f32 %v855_v61, %v1509_v57  ;;  %v910_v40 = vmul.f32 %v892_v28, %v870_v3 }
 0x284   :  { %v1138_v26 = vpop.eup %1137  ;;  %v872_v8 = vmul.f32 %v856_v12, %v1512_v60  ;;  %v857_v4 = vadd.f32 0.5, %v841_v38  ;;  %v844_v46 = vmul.f32 0.5, %v1136_v14  ;;  %v909_v45 = vmul.f32 %v892_v28, %v869_v1 }
 0x285   :  { %v1140_v39 = vpop.eup %1139  ;;  %v874_v35 = vmul.f32 %v858_v21, %v1515_v43  ;;  %v859_v37 = vadd.f32 0.5, %v843_v55  ;;  %v846_v30 = vmul.f32 0.5, %v1138_v26  ;;  %v911_v57 = vmul.f32 %v892_v28, %v871_v47 }
 0x286   :  { %v1142_v33 = vpop.eup %1141  ;;  %v873_v49 = vmul.f32 %v857_v4, %v1518_v54  ;;  %v912_v48 = vmul.f32 %v897_v53, %v872_v8  ;;  %v860_v20 = vadd.f32 0.5, %v844_v46  ;;  %v845_v16 = vmul.f32 0.5, %v1140_v39 }
 0x287   :  { %v875_v60 = vmul.f32 %v859_v37, %v1521_v13  ;;  %v914_v17 = vmul.f32 %v897_v53, %v874_v35  ;;  %v862_v43 = vadd.f32 0.5, %v846_v30  ;;  %v847_v19 = vmul.f32 0.5, %v1142_v33 }
 0x288   :  { %v920_v29 = vadd.f32 %v908_v50, %v904_v63  ;;  %v913_v32 = vmul.f32 %v897_v53, %v873_v49  ;;  %v876_v22 = vmul.f32 %v860_v20, %v1524_v15  ;;  %v861_v54 = vadd.f32 0.5, %v845_v16 }
 0x289   :  { %v938_v44 = vadd.f32 %v910_v40, %v906_v7  ;;  %v915_v36 = vmul.f32 %v897_v53, %v875_v60  ;;  %v878_v9 = vmul.f32 %v862_v43, %v1527_v62  ;;  %v863_v13 = vadd.f32 0.5, %v847_v19 }
 0x28a   :  { %v929_v51 = vadd.f32 %v909_v45, %v905_v2  ;;  %v921_v52 = vadd.f32 %v920_v29, %v912_v48  ;;  %v916_v41 = vmul.f32 %v902_v34, %v876_v22  ;;  %v877_v42 = vmul.f32 %v861_v54, %v1530_v27 }
 0x28b   :  { %v947_v56 = vadd.f32 %v911_v57, %v907_v18  ;;  %v939_v58 = vadd.f32 %v938_v44, %v914_v17  ;;  %v918_v59 = vmul.f32 %v902_v34, %v878_v9  ;;  %v879_v31 = vmul.f32 %v863_v13, %v1533_v0 }
 0x28c   :  { %v930_v61 = vadd.f32 %v929_v51, %v913_v32  ;;  %v922_v5 = vadd.f32 %v921_v52, %v916_v41  ;;  %v917_v15 = vmul.f32 %v902_v34, %v877_v42  ;;  %v1168_v4 = vmov 1966171168  }
 0x28d   :  { %v948_v6 = vadd.f32 %v947_v56, %v915_v36  ;;  %v940_v10 = vadd.f32 %v939_v58, %v918_v59  ;;  %v919_v11 = vmul.f32 %v902_v34, %v879_v31  ;;  %v969_v39 = vunpack.c.l.s4 %v1168_v4 }
 0x28e   :  { %v923_v12 = vrot.slane %v922_v5, 4  ;;  %v931_v38 = vadd.f32 %v930_v61, %v917_v15  ;;  %v957_v18 = vstv %s1567_s6  ;;  %s1143_s6 = scalar_lea.vmem %s1003_s10, 64 }
 0x28f   :  { %v941_v62 = vrot.slane %v940_v10, 4  ;;  %v949_v14 = vadd.f32 %v948_v6, %v919_v11  ;;  %v970_v49 = vunpack.c.0.s8 %v969_v39  ;;  %p1144_p0 = scmp.ne.s32.totalorder %s1003_s10, %s1143_s6  ;;  %p1149_p2 = scmp.lt.s32.totalorder %s1143_s6, %s1143_s6 }
 0x290   :  { %v924_v25 = vadd.f32 %v923_v12, %v922_v5  ;;  %v932_v3 = vrot.slane %v931_v38, 4 }
 0x291   :  { %v942_v21 = vadd.f32 %v941_v62, %v940_v10  ;;  %v950_v55 = vrot.slane %v949_v14, 4  ;;  %v973_v48 = vsub.s32 %v970_v49, %v1273_v24  ;;  %p1150_p3 = por %p1149_p2, %p1148_p1 }
 0x292   :  { %v925_v27 = vrot.slane %v924_v25, 2  ;;  %v933_v26 = vadd.f32 %v932_v3, %v931_v38 }
 0x293   :  { %v943_v63 = vrot.slane %v942_v21, 2  ;;  %v951_v1 = vadd.f32 %v950_v55, %v949_v14  ;;  %p1151_p4 = pnand %p1150_p3, %p1144_p0 }
 0x294   :  { %v926_v8 = vadd.f32 %v925_v27, %v924_v25  ;;  %v934_v0 = vrot.slane %v933_v26, 2 }
 0x295   :  { %v944_v28 = vadd.f32 %v943_v63, %v942_v21  ;;  %v952_v7 = vrot.slane %v951_v1, 2 }
 0x296   :  { %v927_v47 = vrot.slane %v926_v8, 1  ;;  %v935_v35 = vadd.f32 %v934_v0, %v933_v26 }
 0x297   :  { %v945_v37 = vrot.slane %v944_v28, 1  ;;  %v953_v33 = vadd.f32 %v952_v7, %v951_v1 }
 0x298   :  { %v928_v2 = vadd.f32 %v927_v47, %v926_v8  ;;  %v936_v50 = vrot.slane %v935_v35, 1 }
 0x299   :  { %v946_v46 = vadd.f32 %v945_v37, %v944_v28  ;;  %v954_v53 = vrot.slane %v953_v33, 1 }
 0x29a   :  { %v937_v40 = vadd.f32 %v936_v50, %v935_v35  ;;  %v958_v30 = vadd.f32 %v957_v18, %v928_v2 }
 0x29b   :  { %v955_v60 = vadd.f32 %v954_v53, %v953_v33  ;;  %v960_v20 = vadd.f32 %v957_v18, %v946_v46 }
 0x29c   :  { %v959_v45 = vadd.f32 %v957_v18, %v937_v40 }
 0x29d   :  { %v961_v16 = vadd.f32 %v957_v18, %v955_v60 }
 0x29e   :  { %v966_v57 = vcombine.low %v958_v30, %v959_v45 }
 0x29f   :  { %v967_v17 = vcombine.low %v960_v20, %v961_v16 }
 0x2a0   :  { %v974_v43 = vrot.slane %v966_v57, %v973_v48 }
 0x2a1   :  { %v981_v19 = vrot.slane %v967_v17, %v973_v48 }
 0x2a3   :  { %v982_v29 = vcombine.low %v974_v43, %v981_v19 }
 0x2a5   :  { %v989_v32 = vrot.slane %v982_v29, %v973_v48 }
 0x2a7   :  { %995 = vst.msk [vmem:[#allocation3] sm:$0xf] %vm993_vm1, %v989_v32 }
 0x2a8   :  { %1154 = shalt.err (!%p1151_p4)
}
 0x2a9   :  { %1005 = dma.vmem_to_hbm [thread:$0]  %s1003_s10, 64, %s1568_s7, [#allocation4]  }
 0x2aa   :  { %1163 = dma.done.wait [#allocation4], 64  }
 0x2ab   :  { %1164 = vsyncadd [#allocation4], 4294967232 }
 0x2ac   :  { %1009 = vsyncpa [#allocation4], 1 }

</bundles_post_ra>
